<compile_context>
chip_gen: v6e
topology: v6e:2x2x1
jax: 0.10.0
libtpu: 0.0.40
codegen_flags: <defaults>
</compile_context>

<pallas_src>
import jax
import jax.numpy as jnp
from jax.experimental import pallas as pl
from jax.experimental.pallas import tpu as pltpu

KH = KW = 3          # kernel_size=3
PAD = 1              # padding=1
STRIDE = 1           # stride=1
EPS = 1e-5           # BatchNorm eps


def _round_up(x, m):
    return ((x + m - 1) // m) * m


def conv_stats_kernel(xp_ref, w_ref, y_ref, sum_ref, sqsum_ref):
    """Per-batch-tile 3x3 conv + single-pass per-channel sum / sum-of-squares.

    xp_ref   : (NB, H+2, W+2, C)  bf16 padded input tile
    w_ref    : (KH*KW, C, OCp)    bf16 weights (OC zero-padded to OCp, lane dense)
    y_ref    : (NB, H, W, OCp)    f32 conv output tile
    sum_ref  : (1, 1, OCp)        f32 per-tile channel sum
    sqsum_ref: (1, 1, OCp)        f32 per-tile channel sum of squares
    """
    h, w = y_ref.shape[1], y_ref.shape[2]
    xp = xp_ref[...]

    # 9 shifted-window taps; each is a bf16 MXU matmul with f32 accumulation,
    # accumulated directly into the VMEM-resident output block so no
    # (NB,H,W,OCp) accumulator value stays live across the tap loop.
    for kh in range(KH):
        for kw in range(KW):
            tap = xp[:, kh:kh + h, kw:kw + w, :]            # (NB, H, W, C) bf16
            contrib = jax.lax.dot_general(
                tap, w_ref[kh * KW + kw],
                dimension_numbers=(((3,), (0,)), ((), ())),
                preferred_element_type=jnp.float32)
            if kh == 0 and kw == 0:
                y_ref[...] = contrib
            else:
                y_ref[...] += contrib

    # BatchNorm statistics in one pass over the tile: per-channel sum and
    # sum-of-squares (VPU/XLU work, overlapped with the next tile's DMAs).
    y = y_ref[...]
    sum_ref[...] = jnp.sum(y, axis=(0, 1, 2), keepdims=True).reshape(1, 1, -1)
    sqsum_ref[...] = jnp.sum(y * y, axis=(0, 1, 2), keepdims=True).reshape(1, 1, -1)


def bn_apply_kernel(y_ref, scale_ref, shift_ref, o_ref):
    """Lane-dense normalize: o = y * scale + shift (single FMA + one store)."""
    o_ref[...] = y_ref[...] * scale_ref[...] + shift_ref[...]


def conv_bn_2d(x_nchw, weight_oihw, gamma, beta, *, eps=EPS):
    """ConvBn2d forward. x: (N,C,H,W); weight: (OC,C,3,3); gamma/beta: (OC,).

    Returns (N, OC, H, W) float32 (training-mode BatchNorm with batch stats).
    """
    n, c, h, w = x_nchw.shape
    oc = weight_oihw.shape[0]
    ocp = _round_up(oc, 128)              # lane-dense output channel count
    hp, wp = h + 2 * PAD, w + 2 * PAD
    compute_dtype = jnp.bfloat16          # bf16 MXU inputs, f32 accumulation

    # ---- glue: NCHW -> NHWC, bf16 cast, spatial zero pad, weight repack ----
    x_nhwc = jnp.transpose(x_nchw, (0, 2, 3, 1)).astype(compute_dtype)
    xp = jnp.pad(x_nhwc, ((0, 0), (PAD, PAD), (PAD, PAD), (0, 0)))
    # TODO(synk): fold the spatial zero-pad into pass 1 (manual halo DMA /
    # edge masking) to save one extra HBM round-trip of the input.
    w_t = jnp.transpose(weight_oihw, (2, 3, 1, 0)).reshape(KH * KW, c, oc)
    w_t = jnp.pad(w_t.astype(compute_dtype), ((0, 0), (0, 0), (0, ocp - oc)))

    # ---- pass 1: conv + per-tile channel sums, pipelined over batch ----
    # Per-step VMEM = 2x input tile + 2x (y tile + stats) + resident weights;
    # tiny here, but keep an explicit limit so bigger (ResNet-scale) tilings
    # are re-derived to fit v7x's 64 MiB physical / 32 MiB scoped VMEM.
    vmem_limit = 32 * 1024 * 1024
    y_conv, part_sum, part_sqsum = pl.pallas_call(
        conv_stats_kernel,
        grid=(n,),
        in_specs=[
            pl.BlockSpec((1, hp, wp, c), lambda i: (i, 0, 0, 0)),
            pl.BlockSpec((KH * KW, c, ocp), lambda i: (0, 0, 0)),
        ],
        out_specs=(
            pl.BlockSpec((1, h, w, ocp), lambda i: (i, 0, 0, 0)),
            pl.BlockSpec((1, 1, ocp), lambda i: (i, 0, 0)),
            pl.BlockSpec((1, 1, ocp), lambda i: (i, 0, 0)),
        ),
        out_shape=(
            jax.ShapeDtypeStruct((n, h, w, ocp), jnp.float32),
            jax.ShapeDtypeStruct((n, 1, ocp), jnp.float32),
            jax.ShapeDtypeStruct((n, 1, ocp), jnp.float32),
        ),
        compiler_params=pltpu.CompilerParams(
            dimension_semantics=("parallel",),
            vmem_limit_bytes=vmem_limit),
    )(xp, w_t)

    # ---- tiny per-channel glue: global batch stats -> folded scale/shift ----
    cnt = jnp.float32(n * h * w)
    mean = jnp.sum(part_sum[:, 0, :], axis=0) / cnt            # (OCp,)
    ex2 = jnp.sum(part_sqsum[:, 0, :], axis=0) / cnt
    var = jnp.maximum(ex2 - mean * mean, 0.0)                  # biased variance
    inv = jax.lax.rsqrt(var + eps)
    gamma_p = jnp.pad(gamma.astype(jnp.float32), (0, ocp - oc))
    beta_p = jnp.pad(beta.astype(jnp.float32), (0, ocp - oc))
    scale = (gamma_p * inv).reshape(1, ocp)
    shift = (beta_p - mean * gamma_p * inv).reshape(1, ocp)
    # TODO(synk): PyTorch training mode also updates running_mean/running_var
    # buffers; return (mean, var) here if that side effect is needed.

    # ---- pass 2: lane-dense normalize, pipelined over batch ----
    out_nhwc = pl.pallas_call(
        bn_apply_kernel,
        grid=(n,),
        in_specs=[
            pl.BlockSpec((1, h, w, ocp), lambda i: (i, 0, 0, 0)),
            pl.BlockSpec((1, ocp), lambda i: (0, 0)),
            pl.BlockSpec((1, ocp), lambda i: (0, 0)),
        ],
        out_specs=pl.BlockSpec((1, h, w, ocp), lambda i: (i, 0, 0, 0)),
        out_shape=jax.ShapeDtypeStruct((n, h, w, ocp), jnp.float32),
        compiler_params=pltpu.CompilerParams(
            dimension_semantics=("parallel",),
            vmem_limit_bytes=vmem_limit),
    )(y_conv, scale, shift)

    # glue: drop channel padding, NHWC -> NCHW
    return jnp.transpose(out_nhwc[..., :oc], (0, 3, 1, 2))


def _reference(x_nchw, weight_oihw, gamma, beta, eps=EPS):
    """Pure-JAX reference (same bf16 input rounding as the kernel, f32 math)."""
    xr = x_nchw.astype(jnp.bfloat16).astype(jnp.float32)
    wr = weight_oihw.astype(jnp.bfloat16).astype(jnp.float32)
    y = jax.lax.conv_general_dilated(
        xr, wr, window_strides=(STRIDE, STRIDE),
        padding=((PAD, PAD), (PAD, PAD)),
        dimension_numbers=("NCHW", "OIHW", "NCHW"))
    mean = jnp.mean(y, axis=(0, 2, 3), keepdims=True)
    var = jnp.mean((y - mean) ** 2, axis=(0, 2, 3), keepdims=True)
    g = gamma.reshape(1, -1, 1, 1)
    b = beta.reshape(1, -1, 1, 1)
    return (y - mean) * jax.lax.rsqrt(var + eps) * g + b


if __name__ == "__main__":
    key = jax.random.PRNGKey(0)
    kx, kw = jax.random.split(key)

    N, C, OC, H, W = 2, 4, 8, 16, 16
    x = jax.random.normal(kx, (N, C, H, W), dtype=jnp.float32)
    # Conv2d weight (kaiming-ish scale, deterministic); bias=False in module.
    weight = jax.random.normal(kw, (OC, C, KH, KW), dtype=jnp.float32) * 0.1
    # BatchNorm2d default init: weight=1, bias=0.
    gamma = jnp.ones((OC,), jnp.float32)
    beta = jnp.zeros((OC,), jnp.float32)

    out = jax.block_until_ready(conv_bn_2d(x, weight, gamma, beta))
    ref = jax.block_until_ready(_reference(x, weight, gamma, beta))

    assert out.shape == (N, OC, H, W)
    assert out.dtype == jnp.float32
    max_err = float(jnp.max(jnp.abs(out - ref)))
    assert jnp.allclose(out, ref, atol=1e-3, rtol=1e-3), max_err

    print("KERNEL_OK")
</pallas_src>

<mosaic_0001>
module attributes {stable_mosaic.version = 11 : i64} {
  func.func @conv_stats_kernel(%arg0: i32, %arg1: memref<1x18x18x4xbf16, #tpu.memory_space<vmem>>, %arg2: memref<9x4x128xbf16, #tpu.memory_space<vmem>>, %arg3: memref<1x16x16x128xf32, #tpu.memory_space<vmem>>, %arg4: memref<1x1x128xf32, #tpu.memory_space<vmem>>, %arg5: memref<1x1x128xf32, #tpu.memory_space<vmem>>) attributes {dimension_semantics = [#tpu.dimension_semantics<parallel>], iteration_bounds = array<i64: 2>, scalar_prefetch = 0 : i64, scratch_operands = 0 : i64, tpu.core_type = #tpu.core_type<tc>, window_params = [{transform_indices = @transform_0, window_bounds = array<i64: 1, 18, 18, 4>}, {pipeline_mode = #tpu.pipeline_mode<synchronous>, transform_indices = @transform_1, window_bounds = array<i64: 9, 4, 128>}, {transform_indices = @transform_2, window_bounds = array<i64: 1, 16, 16, 128>}, {transform_indices = @transform_3, window_bounds = array<i64: 1, 1, 128>}, {transform_indices = @transform_4, window_bounds = array<i64: 1, 1, 128>}]} {
    %c0 = arith.constant 0 : index
    %c0_0 = arith.constant 0 : index
    %c0_1 = arith.constant 0 : index
    %c0_2 = arith.constant 0 : index
    %0 = vector.load %arg1[%c0, %c0_0, %c0_1, %c0_2] : memref<1x18x18x4xbf16, #tpu.memory_space<vmem>>, vector<1x18x18x4xbf16>
    %1 = vector.extract_strided_slice %0 {offsets = [0, 0, 0, 0], sizes = [1, 16, 16, 4], strides = [1, 1, 1, 1]} : vector<1x18x18x4xbf16> to vector<1x16x16x4xbf16>
    %c0_3 = arith.constant 0 : index
    %c0_4 = arith.constant 0 : index
    %c0_5 = arith.constant 0 : index
    %2 = vector.load %arg2[%c0_3, %c0_4, %c0_5] : memref<9x4x128xbf16, #tpu.memory_space<vmem>>, vector<1x4x128xbf16>
    %3 = vector.shape_cast %2 : vector<1x4x128xbf16> to vector<4x128xbf16>
    %cst = arith.constant dense<0.000000e+00> : vector<1x16x16x128xf32>
    %4 = tpu.matmul %1, %3, %cst {dimension_numbers = #tpu.dot_dimension_numbers<[3], [0], [0, 1, 2], [1], [0, 0, 0, 1, 0, 2, 1, 1], [], []>} : vector<1x16x16x4xbf16>, vector<4x128xbf16>, vector<1x16x16x128xf32> -> vector<1x16x16x128xf32>
    %c0_6 = arith.constant 0 : index
    %c0_7 = arith.constant 0 : index
    %c0_8 = arith.constant 0 : index
    %c0_9 = arith.constant 0 : index
    %5 = vector.load %arg3[%c0_6, %c0_7, %c0_8, %c0_9] : memref<1x16x16x128xf32, #tpu.memory_space<vmem>>, vector<1x16x16x128xf32>
    tpu.vector_store %arg3[%c0_6, %c0_7, %c0_8, %c0_9], %4 {strides = array<i32>} : memref<1x16x16x128xf32, #tpu.memory_space<vmem>>, vector<1x16x16x128xf32>,
    %6 = vector.extract_strided_slice %0 {offsets = [0, 0, 1, 0], sizes = [1, 16, 16, 4], strides = [1, 1, 1, 1]} : vector<1x18x18x4xbf16> to vector<1x16x16x4xbf16>
    %c1 = arith.constant 1 : index
    %c0_10 = arith.constant 0 : index
    %c0_11 = arith.constant 0 : index
    %7 = vector.load %arg2[%c1, %c0_10, %c0_11] : memref<9x4x128xbf16, #tpu.memory_space<vmem>>, vector<1x4x128xbf16>
    %8 = vector.shape_cast %7 : vector<1x4x128xbf16> to vector<4x128xbf16>
    %cst_12 = arith.constant dense<0.000000e+00> : vector<1x16x16x128xf32>
    %9 = tpu.matmul %6, %8, %cst_12 {dimension_numbers = #tpu.dot_dimension_numbers<[3], [0], [0, 1, 2], [1], [0, 0, 0, 1, 0, 2, 1, 1], [], []>} : vector<1x16x16x4xbf16>, vector<4x128xbf16>, vector<1x16x16x128xf32> -> vector<1x16x16x128xf32>
    %c0_13 = arith.constant 0 : index
    %c0_14 = arith.constant 0 : index
    %c0_15 = arith.constant 0 : index
    %c0_16 = arith.constant 0 : index
    %10 = vector.load %arg3[%c0_13, %c0_14, %c0_15, %c0_16] : memref<1x16x16x128xf32, #tpu.memory_space<vmem>>, vector<1x16x16x128xf32>
    %11 = arith.addf %10, %9 : vector<1x16x16x128xf32>
    %c0_17 = arith.constant 0 : index
    %c0_18 = arith.constant 0 : index
    %c0_19 = arith.constant 0 : index
    %c0_20 = arith.constant 0 : index
    %12 = vector.load %arg3[%c0_17, %c0_18, %c0_19, %c0_20] : memref<1x16x16x128xf32, #tpu.memory_space<vmem>>, vector<1x16x16x128xf32>
    tpu.vector_store %arg3[%c0_17, %c0_18, %c0_19, %c0_20], %11 {strides = array<i32>} : memref<1x16x16x128xf32, #tpu.memory_space<vmem>>, vector<1x16x16x128xf32>,
    %13 = vector.extract_strided_slice %0 {offsets = [0, 0, 2, 0], sizes = [1, 16, 16, 4], strides = [1, 1, 1, 1]} : vector<1x18x18x4xbf16> to vector<1x16x16x4xbf16>
    %c2 = arith.constant 2 : index
    %c0_21 = arith.constant 0 : index
    %c0_22 = arith.constant 0 : index
    %14 = vector.load %arg2[%c2, %c0_21, %c0_22] : memref<9x4x128xbf16, #tpu.memory_space<vmem>>, vector<1x4x128xbf16>
    %15 = vector.shape_cast %14 : vector<1x4x128xbf16> to vector<4x128xbf16>
    %cst_23 = arith.constant dense<0.000000e+00> : vector<1x16x16x128xf32>
    %16 = tpu.matmul %13, %15, %cst_23 {dimension_numbers = #tpu.dot_dimension_numbers<[3], [0], [0, 1, 2], [1], [0, 0, 0, 1, 0, 2, 1, 1], [], []>} : vector<1x16x16x4xbf16>, vector<4x128xbf16>, vector<1x16x16x128xf32> -> vector<1x16x16x128xf32>
    %c0_24 = arith.constant 0 : index
    %c0_25 = arith.constant 0 : index
    %c0_26 = arith.constant 0 : index
    %c0_27 = arith.constant 0 : index
    %17 = vector.load %arg3[%c0_24, %c0_25, %c0_26, %c0_27] : memref<1x16x16x128xf32, #tpu.memory_space<vmem>>, vector<1x16x16x128xf32>
    %18 = arith.addf %17, %16 : vector<1x16x16x128xf32>
    %c0_28 = arith.constant 0 : index
    %c0_29 = arith.constant 0 : index
    %c0_30 = arith.constant 0 : index
    %c0_31 = arith.constant 0 : index
    %19 = vector.load %arg3[%c0_28, %c0_29, %c0_30, %c0_31] : memref<1x16x16x128xf32, #tpu.memory_space<vmem>>, vector<1x16x16x128xf32>
    tpu.vector_store %arg3[%c0_28, %c0_29, %c0_30, %c0_31], %18 {strides = array<i32>} : memref<1x16x16x128xf32, #tpu.memory_space<vmem>>, vector<1x16x16x128xf32>,
    %20 = vector.extract_strided_slice %0 {offsets = [0, 1, 0, 0], sizes = [1, 16, 16, 4], strides = [1, 1, 1, 1]} : vector<1x18x18x4xbf16> to vector<1x16x16x4xbf16>
    %c3 = arith.constant 3 : index
    %c0_32 = arith.constant 0 : index
    %c0_33 = arith.constant 0 : index
    %21 = vector.load %arg2[%c3, %c0_32, %c0_33] : memref<9x4x128xbf16, #tpu.memory_space<vmem>>, vector<1x4x128xbf16>
    %22 = vector.shape_cast %21 : vector<1x4x128xbf16> to vector<4x128xbf16>
    %cst_34 = arith.constant dense<0.000000e+00> : vector<1x16x16x128xf32>
    %23 = tpu.matmul %20, %22, %cst_34 {dimension_numbers = #tpu.dot_dimension_numbers<[3], [0], [0, 1, 2], [1], [0, 0, 0, 1, 0, 2, 1, 1], [], []>} : vector<1x16x16x4xbf16>, vector<4x128xbf16>, vector<1x16x16x128xf32> -> vector<1x16x16x128xf32>
    %c0_35 = arith.constant 0 : index
    %c0_36 = arith.constant 0 : index
    %c0_37 = arith.constant 0 : index
    %c0_38 = arith.constant 0 : index
    %24 = vector.load %arg3[%c0_35, %c0_36, %c0_37, %c0_38] : memref<1x16x16x128xf32, #tpu.memory_space<vmem>>, vector<1x16x16x128xf32>
    %25 = arith.addf %24, %23 : vector<1x16x16x128xf32>
    %c0_39 = arith.constant 0 : index
    %c0_40 = arith.constant 0 : index
    %c0_41 = arith.constant 0 : index
    %c0_42 = arith.constant 0 : index
    %26 = vector.load %arg3[%c0_39, %c0_40, %c0_41, %c0_42] : memref<1x16x16x128xf32, #tpu.memory_space<vmem>>, vector<1x16x16x128xf32>
    tpu.vector_store %arg3[%c0_39, %c0_40, %c0_41, %c0_42], %25 {strides = array<i32>} : memref<1x16x16x128xf32, #tpu.memory_space<vmem>>, vector<1x16x16x128xf32>,
    %27 = vector.extract_strided_slice %0 {offsets = [0, 1, 1, 0], sizes = [1, 16, 16, 4], strides = [1, 1, 1, 1]} : vector<1x18x18x4xbf16> to vector<1x16x16x4xbf16>
    %c4 = arith.constant 4 : index
    %c0_43 = arith.constant 0 : index
    %c0_44 = arith.constant 0 : index
    %28 = vector.load %arg2[%c4, %c0_43, %c0_44] : memref<9x4x128xbf16, #tpu.memory_space<vmem>>, vector<1x4x128xbf16>
    %29 = vector.shape_cast %28 : vector<1x4x128xbf16> to vector<4x128xbf16>
    %cst_45 = arith.constant dense<0.000000e+00> : vector<1x16x16x128xf32>
    %30 = tpu.matmul %27, %29, %cst_45 {dimension_numbers = #tpu.dot_dimension_numbers<[3], [0], [0, 1, 2], [1], [0, 0, 0, 1, 0, 2, 1, 1], [], []>} : vector<1x16x16x4xbf16>, vector<4x128xbf16>, vector<1x16x16x128xf32> -> vector<1x16x16x128xf32>
    %c0_46 = arith.constant 0 : index
    %c0_47 = arith.constant 0 : index
    %c0_48 = arith.constant 0 : index
    %c0_49 = arith.constant 0 : index
    %31 = vector.load %arg3[%c0_46, %c0_47, %c0_48, %c0_49] : memref<1x16x16x128xf32, #tpu.memory_space<vmem>>, vector<1x16x16x128xf32>
    %32 = arith.addf %31, %30 : vector<1x16x16x128xf32>
    %c0_50 = arith.constant 0 : index
    %c0_51 = arith.constant 0 : index
    %c0_52 = arith.constant 0 : index
    %c0_53 = arith.constant 0 : index
    %33 = vector.load %arg3[%c0_50, %c0_51, %c0_52, %c0_53] : memref<1x16x16x128xf32, #tpu.memory_space<vmem>>, vector<1x16x16x128xf32>
    tpu.vector_store %arg3[%c0_50, %c0_51, %c0_52, %c0_53], %32 {strides = array<i32>} : memref<1x16x16x128xf32, #tpu.memory_space<vmem>>, vector<1x16x16x128xf32>,
    %34 = vector.extract_strided_slice %0 {offsets = [0, 1, 2, 0], sizes = [1, 16, 16, 4], strides = [1, 1, 1, 1]} : vector<1x18x18x4xbf16> to vector<1x16x16x4xbf16>
    %c5 = arith.constant 5 : index
    %c0_54 = arith.constant 0 : index
    %c0_55 = arith.constant 0 : index
    %35 = vector.load %arg2[%c5, %c0_54, %c0_55] : memref<9x4x128xbf16, #tpu.memory_space<vmem>>, vector<1x4x128xbf16>
    %36 = vector.shape_cast %35 : vector<1x4x128xbf16> to vector<4x128xbf16>
    %cst_56 = arith.constant dense<0.000000e+00> : vector<1x16x16x128xf32>
    %37 = tpu.matmul %34, %36, %cst_56 {dimension_numbers = #tpu.dot_dimension_numbers<[3], [0], [0, 1, 2], [1], [0, 0, 0, 1, 0, 2, 1, 1], [], []>} : vector<1x16x16x4xbf16>, vector<4x128xbf16>, vector<1x16x16x128xf32> -> vector<1x16x16x128xf32>
    %c0_57 = arith.constant 0 : index
    %c0_58 = arith.constant 0 : index
    %c0_59 = arith.constant 0 : index
    %c0_60 = arith.constant 0 : index
    %38 = vector.load %arg3[%c0_57, %c0_58, %c0_59, %c0_60] : memref<1x16x16x128xf32, #tpu.memory_space<vmem>>, vector<1x16x16x128xf32>
    %39 = arith.addf %38, %37 : vector<1x16x16x128xf32>
    %c0_61 = arith.constant 0 : index
    %c0_62 = arith.constant 0 : index
    %c0_63 = arith.constant 0 : index
    %c0_64 = arith.constant 0 : index
    %40 = vector.load %arg3[%c0_61, %c0_62, %c0_63, %c0_64] : memref<1x16x16x128xf32, #tpu.memory_space<vmem>>, vector<1x16x16x128xf32>
    tpu.vector_store %arg3[%c0_61, %c0_62, %c0_63, %c0_64], %39 {strides = array<i32>} : memref<1x16x16x128xf32, #tpu.memory_space<vmem>>, vector<1x16x16x128xf32>,
    %41 = vector.extract_strided_slice %0 {offsets = [0, 2, 0, 0], sizes = [1, 16, 16, 4], strides = [1, 1, 1, 1]} : vector<1x18x18x4xbf16> to vector<1x16x16x4xbf16>
    %c6 = arith.constant 6 : index
    %c0_65 = arith.constant 0 : index
    %c0_66 = arith.constant 0 : index
    %42 = vector.load %arg2[%c6, %c0_65, %c0_66] : memref<9x4x128xbf16, #tpu.memory_space<vmem>>, vector<1x4x128xbf16>
    %43 = vector.shape_cast %42 : vector<1x4x128xbf16> to vector<4x128xbf16>
    %cst_67 = arith.constant dense<0.000000e+00> : vector<1x16x16x128xf32>
    %44 = tpu.matmul %41, %43, %cst_67 {dimension_numbers = #tpu.dot_dimension_numbers<[3], [0], [0, 1, 2], [1], [0, 0, 0, 1, 0, 2, 1, 1], [], []>} : vector<1x16x16x4xbf16>, vector<4x128xbf16>, vector<1x16x16x128xf32> -> vector<1x16x16x128xf32>
    %c0_68 = arith.constant 0 : index
    %c0_69 = arith.constant 0 : index
    %c0_70 = arith.constant 0 : index
    %c0_71 = arith.constant 0 : index
    %45 = vector.load %arg3[%c0_68, %c0_69, %c0_70, %c0_71] : memref<1x16x16x128xf32, #tpu.memory_space<vmem>>, vector<1x16x16x128xf32>
    %46 = arith.addf %45, %44 : vector<1x16x16x128xf32>
    %c0_72 = arith.constant 0 : index
    %c0_73 = arith.constant 0 : index
    %c0_74 = arith.constant 0 : index
    %c0_75 = arith.constant 0 : index
    %47 = vector.load %arg3[%c0_72, %c0_73, %c0_74, %c0_75] : memref<1x16x16x128xf32, #tpu.memory_space<vmem>>, vector<1x16x16x128xf32>
    tpu.vector_store %arg3[%c0_72, %c0_73, %c0_74, %c0_75], %46 {strides = array<i32>} : memref<1x16x16x128xf32, #tpu.memory_space<vmem>>, vector<1x16x16x128xf32>,
    %48 = vector.extract_strided_slice %0 {offsets = [0, 2, 1, 0], sizes = [1, 16, 16, 4], strides = [1, 1, 1, 1]} : vector<1x18x18x4xbf16> to vector<1x16x16x4xbf16>
    %c7 = arith.constant 7 : index
    %c0_76 = arith.constant 0 : index
    %c0_77 = arith.constant 0 : index
    %49 = vector.load %arg2[%c7, %c0_76, %c0_77] : memref<9x4x128xbf16, #tpu.memory_space<vmem>>, vector<1x4x128xbf16>
    %50 = vector.shape_cast %49 : vector<1x4x128xbf16> to vector<4x128xbf16>
    %cst_78 = arith.constant dense<0.000000e+00> : vector<1x16x16x128xf32>
    %51 = tpu.matmul %48, %50, %cst_78 {dimension_numbers = #tpu.dot_dimension_numbers<[3], [0], [0, 1, 2], [1], [0, 0, 0, 1, 0, 2, 1, 1], [], []>} : vector<1x16x16x4xbf16>, vector<4x128xbf16>, vector<1x16x16x128xf32> -> vector<1x16x16x128xf32>
    %c0_79 = arith.constant 0 : index
    %c0_80 = arith.constant 0 : index
    %c0_81 = arith.constant 0 : index
    %c0_82 = arith.constant 0 : index
    %52 = vector.load %arg3[%c0_79, %c0_80, %c0_81, %c0_82] : memref<1x16x16x128xf32, #tpu.memory_space<vmem>>, vector<1x16x16x128xf32>
    %53 = arith.addf %52, %51 : vector<1x16x16x128xf32>
    %c0_83 = arith.constant 0 : index
    %c0_84 = arith.constant 0 : index
    %c0_85 = arith.constant 0 : index
    %c0_86 = arith.constant 0 : index
    %54 = vector.load %arg3[%c0_83, %c0_84, %c0_85, %c0_86] : memref<1x16x16x128xf32, #tpu.memory_space<vmem>>, vector<1x16x16x128xf32>
    tpu.vector_store %arg3[%c0_83, %c0_84, %c0_85, %c0_86], %53 {strides = array<i32>} : memref<1x16x16x128xf32, #tpu.memory_space<vmem>>, vector<1x16x16x128xf32>,
    %55 = vector.extract_strided_slice %0 {offsets = [0, 2, 2, 0], sizes = [1, 16, 16, 4], strides = [1, 1, 1, 1]} : vector<1x18x18x4xbf16> to vector<1x16x16x4xbf16>
    %c8 = arith.constant 8 : index
    %c0_87 = arith.constant 0 : index
    %c0_88 = arith.constant 0 : index
    %56 = vector.load %arg2[%c8, %c0_87, %c0_88] : memref<9x4x128xbf16, #tpu.memory_space<vmem>>, vector<1x4x128xbf16>
    %57 = vector.shape_cast %56 : vector<1x4x128xbf16> to vector<4x128xbf16>
    %cst_89 = arith.constant dense<0.000000e+00> : vector<1x16x16x128xf32>
    %58 = tpu.matmul %55, %57, %cst_89 {dimension_numbers = #tpu.dot_dimension_numbers<[3], [0], [0, 1, 2], [1], [0, 0, 0, 1, 0, 2, 1, 1], [], []>} : vector<1x16x16x4xbf16>, vector<4x128xbf16>, vector<1x16x16x128xf32> -> vector<1x16x16x128xf32>
    %c0_90 = arith.constant 0 : index
    %c0_91 = arith.constant 0 : index
    %c0_92 = arith.constant 0 : index
    %c0_93 = arith.constant 0 : index
    %59 = vector.load %arg3[%c0_90, %c0_91, %c0_92, %c0_93] : memref<1x16x16x128xf32, #tpu.memory_space<vmem>>, vector<1x16x16x128xf32>
    %60 = arith.addf %59, %58 : vector<1x16x16x128xf32>
    %c0_94 = arith.constant 0 : index
    %c0_95 = arith.constant 0 : index
    %c0_96 = arith.constant 0 : index
    %c0_97 = arith.constant 0 : index
    %61 = vector.load %arg3[%c0_94, %c0_95, %c0_96, %c0_97] : memref<1x16x16x128xf32, #tpu.memory_space<vmem>>, vector<1x16x16x128xf32>
    tpu.vector_store %arg3[%c0_94, %c0_95, %c0_96, %c0_97], %60 {strides = array<i32>} : memref<1x16x16x128xf32, #tpu.memory_space<vmem>>, vector<1x16x16x128xf32>,
    %c0_98 = arith.constant 0 : index
    %c0_99 = arith.constant 0 : index
    %c0_100 = arith.constant 0 : index
    %c0_101 = arith.constant 0 : index
    %62 = vector.load %arg3[%c0_98, %c0_99, %c0_100, %c0_101] : memref<1x16x16x128xf32, #tpu.memory_space<vmem>>, vector<1x16x16x128xf32>
    %cst_102 = arith.constant dense<0.000000e+00> : vector<128xf32>
    %63 = vector.multi_reduction <add>, %62, %cst_102 [0, 1, 2] : vector<1x16x16x128xf32> to vector<128xf32>
    %64 = vector.shape_cast %63 : vector<128xf32> to vector<1x1x1x128xf32>
    %65 = vector.shape_cast %64 : vector<1x1x1x128xf32> to vector<1x1x128xf32>
    %c0_103 = arith.constant 0 : index
    %c0_104 = arith.constant 0 : index
    %c0_105 = arith.constant 0 : index
    %66 = vector.load %arg4[%c0_103, %c0_104, %c0_105] : memref<1x1x128xf32, #tpu.memory_space<vmem>>, vector<1x1x128xf32>
    tpu.vector_store %arg4[%c0_103, %c0_104, %c0_105], %65 {strides = array<i32>} : memref<1x1x128xf32, #tpu.memory_space<vmem>>, vector<1x1x128xf32>,
    %67 = arith.mulf %62, %62 : vector<1x16x16x128xf32>
    %cst_106 = arith.constant dense<0.000000e+00> : vector<128xf32>
    %68 = vector.multi_reduction <add>, %67, %cst_106 [0, 1, 2] : vector<1x16x16x128xf32> to vector<128xf32>
    %69 = vector.shape_cast %68 : vector<128xf32> to vector<1x1x1x128xf32>
    %70 = vector.shape_cast %69 : vector<1x1x1x128xf32> to vector<1x1x128xf32>
    %c0_107 = arith.constant 0 : index
    %c0_108 = arith.constant 0 : index
    %c0_109 = arith.constant 0 : index
    %71 = vector.load %arg5[%c0_107, %c0_108, %c0_109] : memref<1x1x128xf32, #tpu.memory_space<vmem>>, vector<1x1x128xf32>
    tpu.vector_store %arg5[%c0_107, %c0_108, %c0_109], %70 {strides = array<i32>} : memref<1x1x128xf32, #tpu.memory_space<vmem>>, vector<1x1x128xf32>,
    return
  }
  func.func @transform_0(%arg0: i32) -> (i32, i32, i32, i32) {
    %c0_i32 = arith.constant 0 : i32
    %c0_i32_0 = arith.constant 0 : i32
    %c0_i32_1 = arith.constant 0 : i32
    %c0_i32_2 = arith.constant 0 : i32
    return %arg0, %c0_i32, %c0_i32_0, %c0_i32_1 : i32, i32, i32, i32
  }
  func.func @transform_1(%arg0: i32) -> (i32, i32, i32) {
    %c0_i32 = arith.constant 0 : i32
    %c0_i32_0 = arith.constant 0 : i32
    %c0_i32_1 = arith.constant 0 : i32
    %c0_i32_2 = arith.constant 0 : i32
    return %c0_i32, %c0_i32_0, %c0_i32_1 : i32, i32, i32
  }
  func.func @transform_2(%arg0: i32) -> (i32, i32, i32, i32) {
    %c0_i32 = arith.constant 0 : i32
    %c0_i32_0 = arith.constant 0 : i32
    %c0_i32_1 = arith.constant 0 : i32
    %c0_i32_2 = arith.constant 0 : i32
    return %arg0, %c0_i32, %c0_i32_0, %c0_i32_1 : i32, i32, i32, i32
  }
  func.func @transform_3(%arg0: i32) -> (i32, i32, i32) {
    %c0_i32 = arith.constant 0 : i32
    %c0_i32_0 = arith.constant 0 : i32
    %c0_i32_1 = arith.constant 0 : i32
    return %arg0, %c0_i32, %c0_i32_0 : i32, i32, i32
  }
  func.func @transform_4(%arg0: i32) -> (i32, i32, i32) {
    %c0_i32 = arith.constant 0 : i32
    %c0_i32_0 = arith.constant 0 : i32
    %c0_i32_1 = arith.constant 0 : i32
    return %arg0, %c0_i32, %c0_i32_0 : i32, i32, i32
  }
}

</mosaic_0001>

<bundles_post_ra>
// kernel: tpu_custom_call.1
= control target key start
LH: loop header
LB: loop body
LE: loop exit
PB: predicated region body
PF: predicated region fallthrough
CT: control target
= control target key end

     0   :  { %10 = vsyncpa [#allocation3], 0  ;;  %s6408_s0 = inlined_call_operand.vmem [shape: bf16[2,18,18,4], index: 0, kind: input, shape index: {}]   ;;  %s6409_s1 = inlined_call_operand.vmem [shape: bf16[9,4,128], index: 1, kind: input, shape index: {}]   ;;  %s6410_s2 = inlined_call_operand.hbm [shape: f32[2,16,16,128], index: 2, kind: output, shape index: {0}]   ;;  %s6411_s3 = inlined_call_operand.hbm [shape: f32[2,1,128], index: 3, kind: output, shape index: {1}]   ;;  %s6412_s4 = inlined_call_operand.hbm [shape: f32[2,1,128], index: 4, kind: output, shape index: {2}]  }
   0x1   :  { %12 = vsyncpa [#allocation3 + $0x1], 0 }
   0x2   :  { %13 = vsyncpa [#allocation5], 0 }
   0x3   :  { %15 = vsyncpa [#allocation5 + $0x1], 0  ;;  %s4734_s15 = smov 0   ;;  %s4736_s16 = smov 0  }
   0x4   :  { %s4738_s17 = smov 0   ;;  %s4740_s18 = smov 0  }
   0x5 LB: > { %s4755_s19 = sadd.s32 4294967295, %s4702_s18   ;;  %s3807_s20 = sadd.s32 4294967294, %s4702_s18   ;;  %s4702_s18 = sphi %s4740_s18, %s6649_s18   ;;  %s4698_s17 = sphi %s4738_s17, %s6648_s17   ;;  %s4694_s16 = sphi %s4736_s16, %s6647_s16   ;;  %s4690_s15 = sphi %s4734_s15, %s6646_s15  }
   0x6   : > { %s4759_s21 = sadd.s32 1, %s4702_s18   ;;  %s75_s22 = sadd.s32 1, %s4698_s17 }
   0x7   : > { %s72_s23 = ssub.s32 %s4702_s18, %s4759_s21  ;;  %p85_p0 = scmp.ne.s32.totalorder %s4698_s17, %s4694_s16 }
   0x8   : > { %p73_p1 = scmp.eq.s32.totalorder %s72_s23, 0  ;;  %p86_p2 = scmp.eq.s32.totalorder %s4755_s19, 1 }
   0x9   : > { %p91_p3 = scmp.ne.s32.totalorder %s4694_s16, %s4690_s15  ;;  %p92_p4 = scmp.eq.s32.totalorder %s3807_s20, 1 }
   0xa   : > { %s4772_s24 = scalar_select %p73_p1, %s4698_s17, %s75_s22  }
   0xb   : > { %p4774_p5 = por %p86_p2, %p85_p0  ;;  %p4778_p6 = por %p92_p4, %p91_p3 }
   0xc   : > { %p3810_p7 = scmp.ge.s32.totalorder %s4702_s18, 1  ;;  %p173_p8 = scmp.lt.s32.totalorder %s4702_s18, 3 }
   0xe   : > { %p174_p9 = pnand %p3810_p7, %p173_p8 }
  0x10   : > { %177 = sbr.rel (%p174_p9) target bundleno = 596 (0x254), region = 28 }
  0x15   : > { %v267_v0 = vld [vmem:[%s6409_s1] sm:$0x3]  ;;  %vm397_vm0 = vcmask 1041408   ;;  %p207_p10 = scmp.lt.s32.totalorder %s4755_s19, 1  ;;  %v3845_v2 = vld [vmem:[%s6409_s1 + $0x2] sm:$0x3] }
  0x16   : > { %4507 = vmatprep.subr.msk.bf16.mxu1 %vm397_vm0, %v267_v0  ;;  %v399_v1 = vsel %vm397_vm0, %v267_v0, 0  ;;  %4506 = vmatprep.subr.msk.bf16.mxu0 %vm397_vm0, %v267_v0  ;;  %v3878_v3 = vld [vmem:[%s6409_s1 + $0x4] sm:$0x3]  ;;  %v3927_v4 = vld [vmem:[%s6409_s1 + $0x6] sm:$0x3]  ;;  %vm348_vm1 = vcmask 31744  }
  0x17   : > { %4505 = vmatpush3.bf16.msra.mxu1 %v399_v1  ;;  %s208_s7 = scalar_select %p207_p10, %s4755_s19, 1  ;;  %4199 = vmatpush3.bf16.msra.mxu0 %v399_v1  ;;  %v4806_v5 = vld [vmem:[%s6409_s1 + $0x8] sm:$0x3]  ;;  %v1080_v6 = vsel %vm397_vm0, %v3845_v2, 0  ;;  %v1569_v7 = vsel %vm397_vm0, %v3878_v3, 0  ;;  %v4816_v8 = vsel %vm397_vm0, %v3927_v4, 0 }
  0x18   : > { %4508 = vmatprep.subr.msk.bf16.mxu1 %vm397_vm0, %v3845_v2  ;;  %4509 = vmatprep.subr.msk.bf16.mxu0 %vm397_vm0, %v3878_v3  ;;  %v4820_v9 = vsel %vm397_vm0, %v4806_v5, 0  ;;  %vm596_vm2 = vsmask.f32 3328  ;;  %vm597_vm3 = vsmask.f32 7440  ;;  %vm1357_vm4 = vcmask 1042432  }
  0x19   : > { %s4516_s12 = smul.u32 216, %s208_s7  ;;  %vm1358_vm5 = vcmask 1046532   ;;  %vm5012_vm6 = vmor %vm596_vm2, %vm597_vm3  ;;  %v6462_v3 = vmov 0  ;;  %s6153_s8 = sand.u32 1, %s4694_s16  }
  0x1a   : > { %v6463_v3 = vsel %vm5012_vm6, 4294967295, %v6462_v3  ;;  %vm5037_vm7 = vmor %vm1357_vm4, %vm1358_vm5  ;;  %s3811_s9 = sshll.u32 %s6153_s8, 8  ;;  %s4044_s11 = sshll.u32 %s4755_s19, 12 }
  0x1b   : > { %s4811_s22 = scalar_lea.vmem %s6408_s0, %s4516_s12  ;;  %6464 = vst [vmem:[#allocation18_spill] sm:$0xff] %v6463_v3  ;;  %s6177_s10 = scalar_lea.vmem [#allocation2], %s3811_s9 }
  0x1c   : > { %v4823_v10 = vld [vmem:[%s4811_s22 + $0x60] sm:$0xf]  ;;  %v4826_v11 = vld [vmem:[%s4811_s22 + $0x64] sm:$0xf]  ;;  %v4829_v12 = vld [vmem:[%s4811_s22 + $0x6c] sm:$0xf] }
  0x1d   : > { %v4833_v13 = vcombine.low %v4823_v10, %v4826_v11  ;;  %v792_v14 = vshrl.u32 %v4823_v10, 16  ;;  %v795_v15 = vshll.u32 %v4823_v10, 16  ;;  %v801_v16 = vshll.u32 %v4826_v11, 16  ;;  %v4839_v17 = vld [vmem:[%s4811_s22 + $0x70] sm:$0xf]  ;;  %s3666_s12 = sshll.u32 %s6177_s10, 4  ;;  %s6296_s12 = int_to_ptr.vmem [resolvable:$true] %s3666_s12 }
  0x1e   : > { %v805_v18 = vshrl.u32 %v4826_v11, 16  ;;  %v4846_v21 = vcombine.low %v4829_v12, %v4839_v17  ;;  %v4849_v22 = vld [vmem:[%s4811_s22] sm:$0xf]  ;;  %v4861_v27 = vld [vmem:[%s4811_s22 + $0x4] sm:$0xf]  ;;  %s3645_s23 = scalar_lea.sflag [#allocation3], %s6153_s8 }
  0x1f   : > { %6453 = vst [vmem:[#allocation9_spill] sm:$0xff] %v4833_v13  ;;  %4216 = vmatprep.mubr.msk.bf16.mxu1 %vm348_vm1, %v4833_v13  ;;  %v4853_v23 = vrot.slane %v792_v14, 4  ;;  %v4855_v24 = vrot.slane %v795_v15, 5  ;;  %v4857_v25 = vrot.slane %v801_v16, 5  ;;  %v3813_v31 = vcombine.low %v4849_v22, %v4861_v27  ;;  %v4872_v32 = vld [vmem:[%s4811_s22 + $0xc] sm:$0xf] }
  0x20   : > { %6454 = vst [vmem:[#allocation10_spill] sm:$0xff] %v4846_v21  ;;  %v4863_v28 = vrot.slane %v805_v18, 4  ;;  %4217 = vmatmul.mubr.msk.bf16.vlgmr.msra.gmra.mxu1 %vm348_vm1, %v4846_v21  ;;  %v600_v33 = vshrl.u32 %v4849_v22, 16  ;;  %v603_v34 = vshll.u32 %v4849_v22, 16  ;;  %v609_v35 = vshll.u32 %v4861_v27, 16  ;;  %s4586_s27 = scalar_lea.vmem %s6296_s12, 4096 }
  0x21   : > { %4233 = vmatpush3.bf16.msra.mxu1 %v1080_v6  ;;  %v613_v36 = vshrl.u32 %v4861_v27, 16  ;;  %v4879_v37 = vld [vmem:[%s4811_s22 + $0x10] sm:$0xf]  ;;  %4200 = vmatprep.mubr.msk.bf16.mxu0 %vm348_vm1, %v3813_v31  ;;  %v3879_v38 = vrot.slane %v4849_v22, 9  ;;  %v1362_v39 = vrot.slane %v4861_v27, 5  ;;  %v624_v41 = vshrl.u32 %v4872_v32, 16  ;;  %p4587_p11 = scmp.ne.s32.totalorder %s6296_s12, %s4586_s27 }
  0x22   : > { %v4886_v40 = vcombine.low %v4872_v32, %v4879_v37  ;;  %v4890_v42 = vld [vmem:[%s4811_s22 + $0x78] sm:$0xf]  ;;  %4510 = vmatprep.subr.msk.bf16.mxu1 %vm397_vm0, %v3927_v4  ;;  %v602_v43 = vrot.slane %v600_v33, 4  ;;  %v605_v44 = vrot.slane %v603_v34, 5  ;;  %v4893_v45 = vrot.slane %v609_v35, 5  ;;  %s4704_s28 = smov [#allocation2]  }
  0x23   : > { %v615_v46 = vrot.slane %v613_v36, 4  ;;  %v4896_v47 = vld [vmem:[%s4811_s22 + $0x7c] sm:$0xf]  ;;  %v4900_v48 = vrot.slane %v1362_v39, 4  ;;  %v626_v49 = vrot.slane %v624_v41, 4  ;;  %v627_v50 = vshll.u32 %v4872_v32, 16  ;;  %p4588_p12 = pnand %p4587_p11, %p4774_p5 }
  0x24   : > { %6455 = vst [vmem:[#allocation11_spill] sm:$0xff] %v4886_v40  ;;  %4201 = vmatmul.mubr.msk.bf16.vlgmr.msra.gmra.mxu0 %vm348_vm1, %v4886_v40  ;;  %v633_v51 = vshll.u32 %v4879_v37, 16  ;;  %v4907_v52 = vld [vmem:[%s4811_s22 + $0x84] sm:$0xf]  ;;  %v606_v53 = vor.u32 %v605_v44, %v602_v43  ;;  %v637_v55 = vshrl.u32 %v4879_v37, 16  ;;  %v1369_v61 = vrot.slane %v4879_v37, 5 }
  0x25   : > { %v616_v54 = vor.u32 %v615_v46, %v4893_v45  ;;  %v4913_v57 = vld [vmem:[%s4811_s22 + $0x88] sm:$0xf]  ;;  %4267 = vmatpush3.bf16.msra.mxu0 %v1569_v7  ;;  %v4916_v58 = vld [vmem:[%s4811_s22 + $0x18] sm:$0xf]  ;;  %v629_v59 = vrot.slane %v627_v50, 5  ;;  %v4923_v62 = vcombine.low %v4890_v42, %v4896_v47  ;;  %v6466_v41 = vmov 0  ;;  %p4589_p13 = pneg %p4588_p12 }
  0x26   : > { %v4918_v60 = vrot.slane %v633_v51, 5  ;;  %v4926_v63 = vld [vmem:[%s4811_s22 + $0x1c] sm:$0xf]  ;;  %4511 = vmatprep.subr.msk.bf16.mxu0 %vm397_vm0, %v4806_v5  ;;  %v4930_v0 = vrot.slane %v606_v53, 4  ;;  %v639_v2 = vrot.slane %v637_v55, 4  ;;  %v4940_v7 = vrot.slane %v1369_v61, 4 }
  0x27   : > { %6456 = vst [vmem:[#allocation12_spill] sm:$0xff] %v4923_v62  ;;  %v4932_v1 = vrot.slane %v616_v54, 4  ;;  %v4936_v4 = vld [vmem:[%s4811_s22 + $0x24] sm:$0xf]  ;;  %v630_v6 = vor.u32 %v629_v59, %v626_v49  ;;  %4220 = vmatprep.mubr.msk.bf16.mxu1 %vm348_vm1, %v4923_v62  ;;  %v4947_v15 = vld [vmem:[%s4811_s22 + $0x28] sm:$0xf]  ;;  %v4952_v18 = vcombine.low %v4907_v52, %v4913_v57  ;;  %v4967_v43 = vcombine.low %v4916_v58, %v4926_v63 }
  0x28   : > { %v640_v16 = vor.u32 %v639_v2, %v4918_v60  ;;  %v4957_v34 = vld [vmem:[%s4811_s22 + $0x90] sm:$0xf]  ;;  %v4960_v35 = vld [vmem:[%s4811_s22 + $0x94] sm:$0xf]  ;;  %v4971_v46 = vld [vmem:[%s4811_s22 + $0x9c] sm:$0xf]  ;;  %v4981_v53 = vcombine.low %v4936_v4, %v4947_v15  ;;  %v612_v59 = vsel %vm5012_vm6, %v4930_v0, %v4893_v45  ;;  %v1363_v30 = vsel %vm5037_vm7, %v3879_v38, %v1362_v39 }
  0x29   : > { %6457 = vst [vmem:[#allocation13_spill] sm:$0xff] %v4952_v18  ;;  %v4962_v36 = vrot.slane %v630_v6, 4  ;;  %6458 = vst [vmem:[#allocation14_spill] sm:$0xff] %v4967_v43  ;;  %4221 = vmatmul.mubr.msk.bf16.gmra.mxu1 %vm348_vm1, %v4952_v18  ;;  %v4984_v54 = vld [vmem:[%s4811_s22 + $0xa0] sm:$0xf]  ;;  %4204 = vmatprep.mubr.msk.bf16.mxu0 %vm348_vm1, %v4967_v43  ;;  %v4993_v6 = vcombine.low %v4957_v34, %v4960_v35  ;;  %v6467_v41 = vsel %vm5037_vm7, 4294967295, %v6466_v41 }
  0x2a   : > { %v4973_v49 = vrot.slane %v640_v16, 4  ;;  %6459 = vst [vmem:[#allocation15_spill] sm:$0xff] %v4981_v53  ;;  %v4996_v16 = vld [vmem:[%s4811_s22 + $0x30] sm:$0xf]  ;;  %v5005_v14 = vcombine.low %v4971_v46, %v4984_v54  ;;  %v5008_v5 = vld [vmem:[%s4811_s22 + $0x34] sm:$0xf] }
  0x2b   : > { %6460 = vst [vmem:[#allocation16_spill] sm:$0xff] %v4993_v6  ;;  %4224 = vmatprep.mubr.msk.bf16.mxu1 %vm348_vm1, %v4993_v6  ;;  %v5023_v19 = vcombine.low %v4996_v16, %v5008_v5  ;;  %v5026_v20 = vld [vmem:[%s4811_s22 + $0x3c] sm:$0xf]  ;;  %v5032_v33 = vld [vmem:[%s4811_s22 + $0x40] sm:$0xf]  ;;  %6468 = vst [vmem:[#allocation20_spill] sm:$0xff] %v6467_v41  ;;  %v636_v51 = vsel %vm5012_vm6, %v4962_v36, %v4918_v60 }
  0x2c   : > { %4205 = vmatmul.mubr.msk.bf16.gmra.mxu0 %vm348_vm1, %v4981_v53  ;;  %6461 = vst [vmem:[#allocation17_spill] sm:$0xff] %v5005_v14  ;;  %v5045_v29 = vcombine.low %v5026_v20, %v5032_v33  ;;  %v5050_v2 = vld [vmem:[%s4811_s22 + $0xa8] sm:$0xf]  ;;  %v5053_v31 = vld [vmem:[%s4811_s22 + $0xac] sm:$0xf]  ;;  %v6474_v56 = vrot.slane %v4872_v32, 9 }
  0x2d   : > { %6465 = vst [vmem:[#allocation19_spill] sm:$0xff] %v5023_v19  ;;  %4208 = vmatprep.mubr.msk.bf16.mxu0 %vm348_vm1, %v5023_v19  ;;  %v5061_v55 = vcombine.low %v5050_v2, %v5053_v31  ;;  %v5067_v50 = vld [vmem:[%s4811_s22 + $0xb4] sm:$0xf]  ;;  %v5070_v44 = vld [vmem:[%s4811_s22 + $0xb8] sm:$0xf]  ;;  %v6475_v60 = vshrl.u32 %v4916_v58, 16 }
  0x2e   : > { %6469 = vst [vmem:[#allocation21_spill] sm:$0xff] %v5045_v29  ;;  %6471 = vst [vmem:[#allocation23_spill] sm:$0xff] %v5067_v50  ;;  %v5075_v0 = vld [vmem:[%s4811_s22 + $0x48] sm:$0xf]  ;;  %v5091_v45 = vcombine.low %v5067_v50, %v5070_v44  ;;  %v5095_v26 = vld [vmem:[%s4811_s22 + $0x4c] sm:$0xf]  ;;  %v1370_v27 = vsel %vm5037_vm7, %v6474_v56, %v1369_v61 }
  0x2f   : > { %6470 = vst [vmem:[#allocation22_spill] sm:$0xff] %v5061_v55  ;;  %6472 = vst [vmem:[#allocation24_spill] sm:$0xff] %v5070_v44  ;;  %v5103_v22 = vcombine.low %v5075_v0, %v5095_v26  ;;  %v5107_v39 = vld [vmem:[%s4811_s22 + $0x54] sm:$0xf]  ;;  %v5110_v36 = vld [vmem:[%s4811_s22 + $0x58] sm:$0xf] }
  0x30   : > { %v5124_v38 = vcombine.low %v5107_v39, %v5110_v36  ;;  %v215_v32 = vld [vmem:[%s4811_s22 + $0x8] sm:$0x1]  ;;  %v218_v61 = vld [vmem:[%s4811_s22 + $0x14] sm:$0x1]  ;;  %v221_v18 = vld [vmem:[%s4811_s22 + $0x20] sm:$0x1] }
  0x31   : > { %4225 = vmatmul.mubr.msk.bf16.gmra.mxu1 %vm348_vm1, %v5005_v14  ;;  %6473 = vst [vmem:[#allocation25_spill] sm:$0xff] %v5103_v22  ;;  %v619_v56 = vshll.u32 %v215_v32, 16  ;;  %v643_v13 = vshll.u32 %v218_v61, 16  ;;  %v1372_v14 = vrot.slane %v218_v61, 5  ;;  %v6476_v6 = vshll.u32 %v4916_v58, 16  ;;  %s4590_s29 = sshll.u32 %s4704_s28, 4  ;;  %s4591_s29 = int_to_ptr.vmem [resolvable:$false] %s4590_s29 }
  0x32   : > { %4228 = vmatprep.mubr.msk.bf16.mxu1 %vm348_vm1, %v5061_v55  ;;  %v650_v55 = vrot.slane %v6475_v60, 4  ;;  %v1365_v60 = vrot.slane %v215_v32, 5  ;;  %v667_v62 = vshll.u32 %v221_v18, 16  ;;  %s4592_s30 = scalar_lea.vmem %s4591_s29, 8192  ;;  %p4593_p0 = scmp.lt.s32.totalorder %s6296_s12, %s4591_s29 }
  0x33   : > { %v653_v37 = vrot.slane %v6476_v6, 5  ;;  %v621_v19 = vrot.slane %v619_v56, 5  ;;  %v645_v43 = vrot.slane %v643_v13, 5  ;;  %v1373_v61 = vsel %vm5037_vm7, %v4940_v7, %v1372_v14  ;;  %p4594_p1 = scmp.lt.s32.totalorder %s4592_s30, %s4586_s27 }
  0x34   : > { %4209 = vmatmul.mubr.msk.bf16.gmra.mxu0 %vm348_vm1, %v5045_v29  ;;  %v657_v29 = vshll.u32 %v4926_v63, 16  ;;  %v1366_v32 = vsel %vm5037_vm7, %v4900_v48, %v1365_v60  ;;  %v5152_v56 = vcombine.low %v1370_v27, %v1373_v61  ;;  %v669_v50 = vrot.slane %v667_v62, 5  ;;  %v224_v48 = vld [vmem:[%s4811_s22 + $0x2c] sm:$0x1] }
  0x35   : > { %4212 = vmatprep.mubr.msk.bf16.mxu0 %vm348_vm1, %v5103_v22  ;;  %v6477_v22 = vshrl.u32 %v4926_v63, 16  ;;  %v3895_v40 = vcombine.low %v1363_v30, %v1366_v32  ;;  %v654_v21 = vor.u32 %v653_v37, %v650_v55  ;;  %v622_v6 = vsel %vm5012_vm6, %v4932_v1, %v621_v19  ;;  %p4595_p2 = por %p4594_p1, %p4593_p0 }
  0x36   : > { %v659_v44 = vrot.slane %v657_v29, 5  ;;  %v646_v13 = vsel %vm5012_vm6, %v4973_v49, %v645_v43  ;;  %v6478_v7 = vshrl.u32 %v4936_v4, 16  ;;  %v6479_v1 = vshll.u32 %v4936_v4, 16 }
  0x37   : > { %v663_v53 = vrot.slane %v6477_v22, 4  ;;  %v3846_v22 = vcombine.low %v612_v59, %v622_v6  ;;  %v655_v30 = vrot.slane %v654_v21, 4  ;;  %v5162_v55 = vcombine.low %v636_v51, %v646_v13  ;;  %p4596_p3 = pnand %p4595_p2, %p4589_p13 }
  0x38   : > { %v674_v14 = vrot.slane %v6478_v7, 4  ;;  %v677_v29 = vrot.slane %v6479_v1, 5  ;;  %v681_v62 = vshll.u32 %v4947_v15, 16  ;;  %v6480_v21 = vshrl.u32 %v4947_v15, 16 }
  0x39   : > { %4229 = vmatmul.mubr.msk.bf16.gmra.mxu1 %vm348_vm1, %v5091_v45  ;;  %v664_v19 = vor.u32 %v663_v53, %v659_v44  ;;  %v660_v43 = vsel %vm5012_vm6, %v655_v30, %v659_v44  ;;  %v691_v59 = vshll.u32 %v224_v48, 16  ;;  %v3881_v51 = vrot.slane %v4916_v58, 9 }
  0x3a   : > { %4234 = vmatprep.mubr.msk.bf16.mxu1 %vm348_vm1, %v3846_v22  ;;  %v687_v49 = vrot.slane %v6480_v21, 4  ;;  %v678_v27 = vor.u32 %v677_v29, %v674_v14  ;;  %v683_v37 = vrot.slane %v681_v62, 5  ;;  %v1376_v60 = vrot.slane %v4926_v63, 5  ;;  %v5195_v29 = vld [vmem:[%s6409_s1 + $0xa] sm:$0x3] }
  0x3b   : > { %v665_v53 = vrot.slane %v664_v19, 4  ;;  %v693_v32 = vrot.slane %v691_v59, 5  ;;  %v1379_v61 = vrot.slane %v221_v18, 5  ;;  %v3882_v6 = vrot.slane %v4936_v4, 9  ;;  %v227_v18 = vld [vmem:[%s4811_s22 + $0x38] sm:$0x1] }
  0x3c   : > { %4213 = vmatmul.mubr.msk.bf16.gmra.mxu0 %vm348_vm1, %v5124_v38  ;;  %v1383_v44 = vrot.slane %v4947_v15, 5  ;;  %v679_v13 = vrot.slane %v678_v27, 4  ;;  %v688_v30 = vor.u32 %v687_v49, %v683_v37  ;;  %v1378_v7 = vrot.slane %v1376_v60, 4 }
  0x3d   : > { %4268 = vmatprep.mubr.msk.bf16.mxu0 %vm348_vm1, %v3895_v40  ;;  %v670_v22 = vsel %vm5012_vm6, %v665_v53, %v669_v50  ;;  %v1377_v40 = vsel %vm5037_vm7, %v3881_v51, %v1376_v60  ;;  %v1386_v19 = vrot.slane %v224_v48, 5  ;;  %v6481_v50 = vshrl.u32 %v4996_v16, 16  ;;  %v230_v60 = vld [vmem:[%s4811_s22 + $0x44] sm:$0x1] }
  0x3e   : > { %v5183_v58 = vcombine.low %v660_v43, %v670_v22  ;;  %v1384_v63 = vsel %vm5037_vm7, %v3882_v6, %v1383_v44  ;;  %v1385_v14 = vrot.slane %v1383_v44, 4  ;;  %v684_v4 = vsel %vm5012_vm6, %v679_v13, %v683_v37 }
  0x3f   : > { %v689_v15 = vrot.slane %v688_v30, 4  ;;  %v698_v1 = vrot.slane %v6481_v50, 4  ;;  %v1380_v62 = vsel %vm5037_vm7, %v1378_v7, %v1379_v61  ;;  %v6482_v43 = vshll.u32 %v4996_v16, 16  ;;  %v5219_v61 = vld [vmem:[%s6409_s1 + $0xc] sm:$0x3] }
  0x40   : > { %v705_v49 = vshll.u32 %v5008_v5, 16  ;;  %v6483_v48 = vshrl.u32 %v5008_v5, 16  ;;  %v5211_v53 = vcombine.low %v1377_v40, %v1380_v62  ;;  %v1387_v27 = vsel %vm5037_vm7, %v1385_v14, %v1386_v19 }
  0x41   : > { %4235 = vmatmul.mubr.msk.bf16.vlgmr.msra.gmra.mxu1 %vm348_vm1, %v5162_v55  ;;  %v701_v21 = vrot.slane %v6482_v43, 5  ;;  %v694_v51 = vsel %vm5012_vm6, %v689_v15, %v693_v32  ;;  %v715_v37 = vshll.u32 %v227_v18, 16  ;;  %v5225_v6 = vcombine.low %v1384_v63, %v1387_v27 }
  0x42   : > { %v711_v59 = vrot.slane %v6483_v48, 4  ;;  %4301 = vmatpush3.bf16.msra.mxu1 %v4816_v8  ;;  %4238 = vmatprep.mubr.msk.bf16.mxu1 %vm348_vm1, %v5183_v58  ;;  %v5223_v8 = vcombine.low %v684_v4, %v694_v51  ;;  %v707_v44 = vrot.slane %v705_v49, 5  ;;  %v6484_v13 = vshrl.u32 %v5026_v20, 16 }
  0x43   : > { %v702_v32 = vor.u32 %v701_v21, %v698_v1  ;;  %4512 = vmatprep.subr.msk.bf16.mxu1 %vm397_vm0, %v5195_v29  ;;  %v717_v22 = vrot.slane %v715_v37, 5  ;;  %v6485_v40 = vshll.u32 %v5026_v20, 16  ;;  %v729_v63 = vshll.u32 %v5032_v33, 16 }
  0x44   : > { %4269 = vmatmul.mubr.msk.bf16.vlgmr.msra.gmra.mxu0 %vm348_vm1, %v5152_v56  ;;  %v722_v30 = vrot.slane %v6484_v13, 4  ;;  %v712_v4 = vor.u32 %v711_v59, %v707_v44  ;;  %v6486_v15 = vshrl.u32 %v5032_v33, 16  ;;  %v739_v50 = vshll.u32 %v230_v60, 16 }
  0x45   : > { %4335 = vmatpush3.bf16.msra.mxu0 %v4820_v9  ;;  %4272 = vmatprep.mubr.msk.bf16.mxu0 %vm348_vm1, %v5211_v53  ;;  %v725_v7 = vrot.slane %v6485_v40, 5  ;;  %v703_v14 = vrot.slane %v702_v32, 4  ;;  %v731_v1 = vrot.slane %v729_v63, 5  ;;  %v3883_v62 = vrot.slane %v4996_v16, 9  ;;  %v233_v63 = vld [vmem:[%s4811_s22 + $0x50] sm:$0x1] }
  0x46   : > { %v735_v19 = vrot.slane %v6486_v15, 4  ;;  %4513 = vmatprep.subr.msk.bf16.mxu0 %vm397_vm0, %v5219_v61  ;;  %v1390_v43 = vrot.slane %v5008_v5, 5  ;;  %v713_v49 = vrot.slane %v712_v4, 4  ;;  %v741_v48 = vrot.slane %v739_v50, 5 }
  0x47   : > { %v726_v9 = vor.u32 %v725_v7, %v722_v30  ;;  %v708_v21 = vsel %vm5012_vm6, %v703_v14, %v707_v44  ;;  %v1393_v59 = vrot.slane %v227_v18, 5  ;;  %v3884_v5 = vrot.slane %v5026_v20, 9 }
  0x48   : > { %v736_v27 = vor.u32 %v735_v19, %v731_v1  ;;  %v1391_v37 = vsel %vm5037_vm7, %v3883_v62, %v1390_v43  ;;  %v1392_v32 = vrot.slane %v1390_v43, 4  ;;  %v718_v16 = vsel %vm5012_vm6, %v713_v49, %v717_v22  ;;  %v236_v62 = vld [vmem:[%s4811_s22 + $0x5c] sm:$0x1] }
  0x49   : > { %v727_v51 = vrot.slane %v726_v9, 4  ;;  %4239 = vmatmul.mubr.msk.bf16.gmra.mxu1 %vm348_vm1, %v5223_v8  ;;  %v1397_v44 = vrot.slane %v5032_v33, 5  ;;  %v1400_v13 = vrot.slane %v230_v60, 5  ;;  %v5253_v30 = vcombine.low %v708_v21, %v718_v16 }
  0x4a   : > { %v737_v40 = vrot.slane %v736_v27, 4  ;;  %v1394_v7 = vsel %vm5037_vm7, %v1392_v32, %v1393_v59  ;;  %v6487_v60 = vshrl.u32 %v5075_v0, 16  ;;  %v6488_v15 = vshll.u32 %v5075_v0, 16 }
  0x4b   : > { %v732_v18 = vsel %vm5012_vm6, %v727_v51, %v731_v1  ;;  %v5262_v22 = vcombine.low %v1391_v37, %v1394_v7  ;;  %v1398_v20 = vsel %vm5037_vm7, %v3884_v5, %v1397_v44  ;;  %v1399_v33 = vrot.slane %v1397_v44, 4  ;;  %4242 = vmatprep.mubr.msk.bf16.mxu1 %vm348_vm1, %v5253_v30 }
  0x4c   : > { %4273 = vmatmul.mubr.msk.bf16.gmra.mxu0 %vm348_vm1, %v5225_v6  ;;  %v746_v14 = vrot.slane %v6487_v60, 4  ;;  %v742_v4 = vsel %vm5012_vm6, %v737_v40, %v741_v48  ;;  %v749_v19 = vrot.slane %v6488_v15, 5  ;;  %v753_v50 = vshll.u32 %v5095_v26, 16 }
  0x4d   : > { %v6489_v9 = vshrl.u32 %v5095_v26, 16  ;;  %v5278_v43 = vcombine.low %v732_v18, %v742_v4  ;;  %4276 = vmatprep.mubr.msk.bf16.mxu0 %vm348_vm1, %v5262_v22  ;;  %v1401_v21 = vsel %vm5037_vm7, %v1399_v33, %v1400_v13  ;;  %v763_v49 = vshll.u32 %v233_v63, 16 }
  0x4e   : > { %v6490_v48 = vshrl.u32 %v5107_v39, 16  ;;  %v5286_v51 = vcombine.low %v1398_v20, %v1401_v21  ;;  %v750_v27 = vor.u32 %v749_v19, %v746_v14  ;;  %v755_v37 = vrot.slane %v753_v50, 5 }
  0x4f   : > { %v759_v1 = vrot.slane %v6489_v9, 4  ;;  %v6491_v32 = vshll.u32 %v5107_v39, 16  ;;  %v765_v5 = vrot.slane %v763_v49, 5  ;;  %v777_v44 = vshll.u32 %v5110_v36, 16 }
  0x50   : > { %v770_v59 = vrot.slane %v6490_v48, 4  ;;  %v6492_v18 = vshrl.u32 %v5110_v36, 16  ;;  %v787_v7 = vshll.u32 %v236_v62, 16  ;;  %v751_v60 = vrot.slane %v750_v27, 4 }
  0x51   : > { %v773_v16 = vrot.slane %v6491_v32, 5  ;;  %v760_v13 = vor.u32 %v759_v1, %v755_v37  ;;  %v3885_v4 = vrot.slane %v5075_v0, 9  ;;  %4243 = vmatmul.mubr.msk.bf16.gmra.mxu1 %vm348_vm1, %v5278_v43  ;;  %v779_v20 = vrot.slane %v777_v44, 5 }
  0x52   : > { %v783_v40 = vrot.slane %v6492_v18, 4  ;;  %v789_v14 = vrot.slane %v787_v7, 5  ;;  %v1404_v15 = vrot.slane %v5095_v26, 5  ;;  %v1407_v19 = vrot.slane %v233_v63, 5  ;;  %v242_v7 = vld [vmem:[%s4811_s22 + $0x74] sm:$0x1] }
  0x53   : > { %v774_v33 = vor.u32 %v773_v16, %v770_v59  ;;  %v756_v50 = vsel %vm5012_vm6, %v751_v60, %v755_v37  ;;  %v761_v9 = vrot.slane %v760_v13, 4  ;;  %v3886_v49 = vrot.slane %v5107_v39, 9  ;;  %v239_v37 = vld [vmem:[%s4811_s22 + $0x68] sm:$0x1] }
  0x54   : > { %4277 = vmatmul.mubr.msk.bf16.gmra.mxu0 %vm348_vm1, %v5286_v51  ;;  %v784_v0 = vor.u32 %v783_v40, %v779_v20  ;;  %v1405_v1 = vsel %vm5037_vm7, %v3885_v4, %v1404_v15  ;;  %v1406_v48 = vrot.slane %v1404_v15, 4  ;;  %v1411_v59 = vrot.slane %v5110_v36, 5 }
  0x55   : > { %v775_v21 = vrot.slane %v774_v33, 4  ;;  %v766_v26 = vsel %vm5012_vm6, %v761_v9, %v765_v5  ;;  %v1414_v27 = vrot.slane %v236_v62, 5  ;;  %v6493_v39 = vor.u32 %v4855_v24, %v4853_v23 }
  0x56   : > { %v5313_v16 = vcombine.low %v756_v50, %v766_v26  ;;  %v785_v44 = vrot.slane %v784_v0, 4  ;;  %v1408_v18 = vsel %vm5037_vm7, %v1406_v48, %v1407_v19  ;;  %v1412_v36 = vsel %vm5037_vm7, %v3886_v49, %v1411_v59 }
  0x57   : > { %v780_v63 = vsel %vm5012_vm6, %v775_v21, %v779_v20  ;;  %v799_v32 = vrot.slane %v6493_v39, 4  ;;  %v5319_v40 = vcombine.low %v1405_v1, %v1408_v18  ;;  %v1413_v5 = vrot.slane %v1411_v59, 4 }
  0x58   : > { %v6494_v23 = vor.u32 %v4863_v28, %v4857_v25  ;;  %4246 = vmatprep.mubr.msk.bf16.mxu1 %vm348_vm1, %v5313_v16  ;;  %v790_v60 = vsel %vm5012_vm6, %v785_v44, %v789_v14  ;;  %v811_v13 = vshll.u32 %v239_v37, 16  ;;  %v6495_v33 = vshrl.u32 %v4829_v12, 16 }
  0x59   : > { %v804_v62 = vsel %vm5012_vm6, %v799_v32, %v4857_v25  ;;  %v6496_v20 = vshll.u32 %v4829_v12, 16  ;;  %v5336_v19 = vcombine.low %v780_v63, %v790_v60  ;;  %4280 = vmatprep.mubr.msk.bf16.mxu0 %vm348_vm1, %v5319_v40  ;;  %v1415_v25 = vsel %vm5037_vm7, %v1413_v5, %v1414_v27  ;;  %v245_v60 = vld [vmem:[%s4811_s22 + $0x80] sm:$0x1] }
  0x5a   : > { %v809_v24 = vrot.slane %v6494_v23, 4  ;;  %v818_v4 = vrot.slane %v6495_v33, 4  ;;  %v825_v28 = vshll.u32 %v4839_v17, 16  ;;  %v6497_v50 = vshrl.u32 %v4839_v17, 16 }
  0x5b   : > { %v821_v15 = vrot.slane %v6496_v20, 5  ;;  %v5345_v9 = vcombine.low %v1412_v36, %v1415_v25  ;;  %v813_v21 = vrot.slane %v811_v13, 5  ;;  %v835_v0 = vshll.u32 %v242_v7, 16  ;;  %4247 = vmatmul.mubr.msk.bf16.gmra.mxu1 %vm348_vm1, %v5336_v19 }
  0x5c   : > { %v831_v14 = vrot.slane %v6497_v50, 4  ;;  %v827_v1 = vrot.slane %v825_v28, 5  ;;  %v6498_v48 = vrot.slane %v4826_v11, 5  ;;  %v6499_v59 = vrot.slane %v4823_v10, 9 }
  0x5d   : > { %v822_v49 = vor.u32 %v821_v15, %v818_v4  ;;  %v1421_v39 = vrot.slane %v239_v37, 5  ;;  %4281 = vmatmul.mubr.msk.bf16.gmra.mxu0 %vm348_vm1, %v5345_v9  ;;  %v814_v32 = vsel %vm5012_vm6, %v809_v24, %v813_v21  ;;  %v837_v18 = vrot.slane %v835_v0, 5 }
  0x5e   : > { %v1419_v26 = vsel %vm5037_vm7, %v6499_v59, %v6498_v48  ;;  %v6500_v63 = vmov %v6498_v48  ;;  %v3888_v36 = vrot.slane %v4829_v12, 9  ;;  %v5362_v5 = vcombine.low %v804_v62, %v814_v32  ;;  %v248_v48 = vld [vmem:[%s4811_s22 + $0x8c] sm:$0x1] }
  0x5f   : > { %v1420_v27 = vrot.slane %v6500_v63, 4  ;;  %v823_v44 = vrot.slane %v822_v49, 4  ;;  %v832_v10 = vor.u32 %v831_v14, %v827_v1  ;;  %v1425_v11 = vrot.slane %v4839_v17, 5 }
  0x60   : > { %v1428_v24 = vrot.slane %v242_v7, 5  ;;  %v6501_v33 = vshrl.u32 %v4890_v42, 16  ;;  %4250 = vmatprep.mubr.msk.bf16.mxu1 %vm348_vm1, %v5362_v5  ;;  %v6502_v17 = vshll.u32 %v4890_v42, 16  ;;  %v849_v25 = vshll.u32 %v4896_v47, 16 }
  0x61   : > { %v1422_v23 = vsel %vm5037_vm7, %v1420_v27, %v1421_v39  ;;  %v828_v37 = vsel %vm5012_vm6, %v823_v44, %v827_v1  ;;  %v833_v12 = vrot.slane %v832_v10, 4  ;;  %v1426_v62 = vsel %vm5037_vm7, %v3888_v36, %v1425_v11 }
  0x62   : > { %v5370_v13 = vcombine.low %v1419_v26, %v1422_v23  ;;  %v842_v4 = vrot.slane %v6501_v33, 4  ;;  %v1427_v20 = vrot.slane %v1425_v11, 4  ;;  %v845_v15 = vrot.slane %v6502_v17, 5 }
  0x63   : > { %v6503_v7 = vshrl.u32 %v4896_v47, 16  ;;  %v859_v50 = vshll.u32 %v245_v60, 16  ;;  %v6504_v14 = vshrl.u32 %v4907_v52, 16  ;;  %v838_v49 = vsel %vm5012_vm6, %v833_v12, %v837_v18 }
  0x64   : > { %4284 = vmatprep.mubr.msk.bf16.mxu0 %vm348_vm1, %v5370_v13  ;;  %v1429_v0 = vsel %vm5037_vm7, %v1427_v20, %v1428_v24  ;;  %v846_v1 = vor.u32 %v845_v15, %v842_v4  ;;  %v6505_v59 = vshll.u32 %v4907_v52, 16  ;;  %v5394_v63 = vcombine.low %v828_v37, %v838_v49  ;;  %v251_v49 = vld [vmem:[%s4811_s22 + $0x98] sm:$0x1] }
  0x65   : > { %v855_v28 = vrot.slane %v6503_v7, 4  ;;  %v866_v21 = vrot.slane %v6504_v14, 4  ;;  %v5396_v27 = vcombine.low %v1426_v62, %v1429_v0  ;;  %v851_v39 = vrot.slane %v849_v25, 5 }
  0x66   : > { %v869_v26 = vrot.slane %v6505_v59, 5  ;;  %v861_v32 = vrot.slane %v859_v50, 5  ;;  %v847_v44 = vrot.slane %v846_v1, 4  ;;  %v873_v10 = vshll.u32 %v4913_v57, 16  ;;  %4251 = vmatmul.mubr.msk.bf16.gmra.mxu1 %vm348_vm1, %v5394_v63 }
  0x67   : > { %v6506_v18 = vshrl.u32 %v4913_v57, 16  ;;  %4285 = vmatmul.mubr.msk.bf16.gmra.mxu0 %vm348_vm1, %v5396_v27  ;;  %v856_v11 = vor.u32 %v855_v28, %v851_v39  ;;  %v883_v37 = vshll.u32 %v248_v48, 16  ;;  %v3889_v24 = vrot.slane %v4890_v42, 9 }
  0x68   : > { %v870_v36 = vor.u32 %v869_v26, %v866_v21  ;;  %v1432_v33 = vrot.slane %v4896_v47, 5  ;;  %v852_v4 = vsel %vm5012_vm6, %v847_v44, %v851_v39  ;;  %v875_v62 = vrot.slane %v873_v10, 5 }
  0x69   : > { %v879_v23 = vrot.slane %v6506_v18, 4  ;;  %v1435_v20 = vrot.slane %v245_v60, 5  ;;  %v857_v17 = vrot.slane %v856_v11, 4  ;;  %v885_v15 = vrot.slane %v883_v37, 5  ;;  %v254_v11 = vld [vmem:[%s4811_s22 + $0xa4] sm:$0x1] }
  0x6a   : > { %v871_v12 = vrot.slane %v870_v36, 4  ;;  %v1433_v25 = vsel %vm5037_vm7, %v3889_v24, %v1432_v33  ;;  %v1434_v7 = vrot.slane %v1432_v33, 4  ;;  %v3890_v42 = vrot.slane %v4907_v52, 9 }
  0x6b   : > { %v880_v50 = vor.u32 %v879_v23, %v875_v62  ;;  %v1439_v47 = vrot.slane %v4913_v57, 5  ;;  %v862_v14 = vsel %vm5012_vm6, %v857_v17, %v861_v32  ;;  %v1442_v21 = vrot.slane %v248_v48, 5 }
  0x6c   : > { %v876_v28 = vsel %vm5012_vm6, %v871_v12, %v875_v62  ;;  %v1436_v60 = vsel %vm5037_vm7, %v1434_v7, %v1435_v20  ;;  %v6507_v0 = vshrl.u32 %v4957_v34, 16  ;;  %v5422_v59 = vcombine.low %v852_v4, %v862_v14 }
  0x6d   : > { %v881_v26 = vrot.slane %v880_v50, 4  ;;  %v5424_v39 = vcombine.low %v1433_v25, %v1436_v60  ;;  %v1440_v52 = vsel %vm5037_vm7, %v3890_v42, %v1439_v47  ;;  %v1441_v57 = vrot.slane %v1439_v47, 4 }
  0x6e   : > { %v890_v1 = vrot.slane %v6507_v0, 4  ;;  %v6508_v32 = vshll.u32 %v4957_v34, 16  ;;  %v897_v36 = vshll.u32 %v4960_v35, 16  ;;  %v6509_v48 = vshrl.u32 %v4960_v35, 16  ;;  %4254 = vmatprep.mubr.msk.bf16.mxu1 %vm348_vm1, %v5422_v59 }
  0x6f   : > { %v886_v18 = vsel %vm5012_vm6, %v881_v26, %v885_v15  ;;  %4288 = vmatprep.mubr.msk.bf16.mxu0 %vm348_vm1, %v5424_v39  ;;  %v907_v23 = vshll.u32 %v251_v49, 16  ;;  %v6510_v37 = vshrl.u32 %v4971_v46, 16  ;;  %v6511_v33 = vshll.u32 %v4971_v46, 16 }
  0x70   : > { %v893_v44 = vrot.slane %v6508_v32, 5  ;;  %v903_v10 = vrot.slane %v6509_v48, 4  ;;  %v5444_v12 = vcombine.low %v876_v28, %v886_v18  ;;  %v1443_v62 = vsel %vm5037_vm7, %v1441_v57, %v1442_v21 }
  0x71   : > { %v914_v24 = vrot.slane %v6510_v37, 4  ;;  %v917_v4 = vrot.slane %v6511_v33, 5  ;;  %v899_v17 = vrot.slane %v897_v36, 5  ;;  %v5448_v25 = vcombine.low %v1440_v52, %v1443_v62 }
  0x72   : > { %v894_v20 = vor.u32 %v893_v44, %v890_v1  ;;  %v909_v15 = vrot.slane %v907_v23, 5  ;;  %v921_v50 = vshll.u32 %v4984_v54, 16  ;;  %4255 = vmatmul.mubr.msk.bf16.gmra.mxu1 %vm348_vm1, %v5444_v12  ;;  %v6512_v14 = vshrl.u32 %v4984_v54, 16 }
  0x73   : > { %v918_v7 = vor.u32 %v917_v4, %v914_v24  ;;  %v904_v47 = vor.u32 %v903_v10, %v899_v17  ;;  %v931_v60 = vshll.u32 %v254_v11, 16  ;;  %4289 = vmatmul.mubr.msk.bf16.gmra.mxu0 %vm348_vm1, %v5448_v25  ;;  %v3891_v1 = vrot.slane %v4957_v34, 9  ;;  %v257_v24 = vld [vmem:[%s4811_s22 + $0xb0] sm:$0x1] }
  0x74   : > { %v895_v42 = vrot.slane %v894_v20, 4  ;;  %v927_v28 = vrot.slane %v6512_v14, 4  ;;  %v923_v0 = vrot.slane %v921_v50, 5  ;;  %v1446_v26 = vrot.slane %v4960_v35, 5 }
  0x75   : > { %v919_v21 = vrot.slane %v918_v7, 4  ;;  %v905_v57 = vrot.slane %v904_v47, 4  ;;  %v933_v32 = vrot.slane %v931_v60, 5  ;;  %v1449_v44 = vrot.slane %v251_v49, 5 }
  0x76   : > { %v900_v52 = vsel %vm5012_vm6, %v895_v42, %v899_v17  ;;  %v928_v48 = vor.u32 %v927_v28, %v923_v0  ;;  %v1447_v10 = vsel %vm5037_vm7, %v3891_v1, %v1446_v26  ;;  %v1448_v18 = vrot.slane %v1446_v26, 4  ;;  %v260_v28 = vld [vmem:[%s4811_s22 + $0xbc] sm:$0x1]  ;;  %v6516_v1 = vld [vmem:[#allocation23_spill] sm:$0xff] }
  0x77   : > { %v924_v36 = vsel %vm5012_vm6, %v919_v21, %v923_v0  ;;  %v910_v23 = vsel %vm5012_vm6, %v905_v57, %v909_v15  ;;  %v3892_v34 = vrot.slane %v4971_v46, 9  ;;  %v1453_v35 = vrot.slane %v4984_v54, 5 }
  0x78   : > { %v1456_v37 = vrot.slane %v254_v11, 5  ;;  %v5470_v33 = vcombine.low %v900_v52, %v910_v23  ;;  %v929_v49 = vrot.slane %v928_v48, 4  ;;  %v1450_v4 = vsel %vm5037_vm7, %v1448_v18, %v1449_v44  ;;  %v6519_v18 = vld [vmem:[#allocation24_spill] sm:$0xff] }
  0x79   : > { %v6513_v62 = vshrl.u32 %v5050_v2, 16  ;;  %v5476_v17 = vcombine.low %v1447_v10, %v1450_v4  ;;  %v1454_v15 = vsel %vm5037_vm7, %v3892_v34, %v1453_v35  ;;  %v1455_v46 = vrot.slane %v1453_v35, 4 }
  0x7a   : > { %v6514_v54 = vshll.u32 %v5050_v2, 16  ;;  %4258 = vmatprep.mubr.msk.bf16.mxu1 %vm348_vm1, %v5470_v33  ;;  %v934_v11 = vsel %vm5012_vm6, %v929_v49, %v933_v32  ;;  %v945_v50 = vshll.u32 %v5053_v31, 16  ;;  %v6515_v42 = vshrl.u32 %v5053_v31, 16 }
  0x7b   : > { %v938_v20 = vrot.slane %v6513_v62, 4  ;;  %v955_v14 = vshll.u32 %v257_v24, 16  ;;  %v5490_v60 = vcombine.low %v924_v36, %v934_v11  ;;  %4292 = vmatprep.mubr.msk.bf16.mxu0 %vm348_vm1, %v5476_v17  ;;  %v1457_v21 = vsel %vm5037_vm7, %v1455_v46, %v1456_v37 }
  0x7c   : > { %v941_v7 = vrot.slane %v6514_v54, 5  ;;  %v951_v47 = vrot.slane %v6515_v42, 4  ;;  %v6517_v26 = vshrl.u32 %v6516_v1, 16  ;;  %v5498_v57 = vcombine.low %v1454_v15, %v1457_v21 }
  0x7d   : > { %v947_v32 = vrot.slane %v945_v50, 5  ;;  %v957_v44 = vrot.slane %v955_v14, 5  ;;  %v6518_v48 = vshll.u32 %v6516_v1, 16  ;;  %4259 = vmatmul.mubr.msk.bf16.gmra.mxu1 %vm348_vm1, %v5490_v60  ;;  %v969_v23 = vshll.u32 %v6519_v18, 16 }
  0x7e   : > { %v942_v0 = vor.u32 %v941_v7, %v938_v20  ;;  %v962_v52 = vrot.slane %v6517_v26, 4  ;;  %v6520_v34 = vshrl.u32 %v6519_v18, 16  ;;  %v979_v37 = vshll.u32 %v260_v28, 16  ;;  %4293 = vmatmul.mubr.msk.bf16.gmra.mxu0 %vm348_vm1, %v5498_v57 }
  0x7f   : > { %v965_v10 = vrot.slane %v6518_v48, 5  ;;  %v952_v49 = vor.u32 %v951_v47, %v947_v32  ;;  %v3893_v62 = vrot.slane %v5050_v2, 9  ;;  %v1460_v20 = vrot.slane %v5053_v31, 5 }
  0x80   : > { %v943_v36 = vrot.slane %v942_v0, 4  ;;  %v975_v35 = vrot.slane %v6520_v34, 4  ;;  %v971_v46 = vrot.slane %v969_v23, 5  ;;  %v1463_v54 = vrot.slane %v257_v24, 5  ;;  %v5542_v23 = vld [vmem:[%s4811_s22 + $0xc0] sm:$0xf] }
  0x81   : > { %v966_v4 = vor.u32 %v965_v10, %v962_v52  ;;  %v953_v7 = vrot.slane %v952_v49, 4  ;;  %v1461_v50 = vsel %vm5037_vm7, %v3893_v62, %v1460_v20  ;;  %v1462_v42 = vrot.slane %v1460_v20, 4  ;;  %v5545_v34 = vld [vmem:[%s4811_s22 + $0xc4] sm:$0xf] }
  0x82   : > { %v948_v15 = vsel %vm5012_vm6, %v943_v36, %v947_v32  ;;  %v976_v14 = vor.u32 %v975_v35, %v971_v46  ;;  %v981_v21 = vrot.slane %v979_v37, 5  ;;  %v3894_v47 = vrot.slane %v6516_v1, 9  ;;  %v263_v35 = vld [vmem:[%s4811_s22 + $0xc8] sm:$0x1] }
  0x83   : > { %v967_v11 = vrot.slane %v966_v4, 4  ;;  %v1467_v0 = vrot.slane %v6519_v18, 5  ;;  %v958_v31 = vsel %vm5012_vm6, %v953_v7, %v957_v44  ;;  %v1464_v2 = vsel %vm5037_vm7, %v1462_v42, %v1463_v54  ;;  %v6524_v4 = vld [vmem:[#allocation11_spill] sm:$0xff]  ;;  %v4018_v42 = vld [vmem:[%s6409_s1 + $0x10] sm:$0x3] }
  0x84   : > { %v1470_v24 = vrot.slane %v260_v28, 5  ;;  %v5521_v26 = vcombine.low %v948_v15, %v958_v31  ;;  %v977_v32 = vrot.slane %v976_v14, 4  ;;  %v5525_v48 = vcombine.low %v1461_v50, %v1464_v2  ;;  %v6526_v50 = vld [vmem:[#allocation14_spill] sm:$0xff]  ;;  %v6527_v14 = vld [vmem:[#allocation15_spill] sm:$0xff]  ;;  %v6533_v31 = vld [vmem:[#allocation12_spill] sm:$0xff] }
  0x85   : > { %v972_v52 = vsel %vm5012_vm6, %v967_v11, %v971_v46  ;;  %v1468_v1 = vsel %vm5037_vm7, %v3894_v47, %v1467_v0  ;;  %v1469_v10 = vrot.slane %v1467_v0, 4  ;;  %v3964_v37 = vrot.slane %v5542_v23, 9  ;;  %v6531_v47 = vld [vmem:[#allocation9_spill] sm:$0xff]  ;;  %v6532_v0 = vld [vmem:[#allocation10_spill] sm:$0xff] }
  0x86   : > { %6521 = vst [vmem:[#allocation23_spill] sm:$0xff] %v5525_v48  ;;  %4262 = vmatprep.mubr.msk.bf16.mxu1 %vm348_vm1, %v5521_v26  ;;  %v982_v44 = vsel %vm5012_vm6, %v977_v32, %v981_v21  ;;  %4296 = vmatprep.mubr.msk.bf16.mxu0 %vm348_vm1, %v5525_v48  ;;  %v2395_v49 = vrot.slane %v5545_v34, 5  ;;  %v2398_v62 = vrot.slane %v263_v35, 5  ;;  %v2407_v7 = vsel %vm397_vm0, %v5195_v29, 0  ;;  %v6528_v29 = vld [vmem:[#allocation19_spill] sm:$0xff]  ;;  %v6530_v21 = vld [vmem:[#allocation25_spill] sm:$0xff] }
  0x87   : > { %v5535_v28 = vcombine.low %v972_v52, %v982_v44  ;;  %v1471_v36 = vsel %vm5037_vm7, %v1469_v10, %v1470_v24  ;;  %v2677_v11 = vsel %vm397_vm0, %v5219_v61, 0  ;;  %v6529_v61 = vld [vmem:[#allocation21_spill] sm:$0xff]  ;;  %v2101_v24 = vshrl.u32 %v5542_v23, 16 }
  0x88   : > { %v5539_v18 = vcombine.low %v1468_v1, %v1471_v36  ;;  %v2396_v20 = vsel %vm5037_vm7, %v3964_v37, %v2395_v49  ;;  %v2397_v15 = vrot.slane %v2395_v49, 4  ;;  %v6534_v2 = vld [vmem:[#allocation13_spill] sm:$0xff]  ;;  %v2104_v52 = vshll.u32 %v5542_v23, 16  ;;  %v6535_v49 = vld [vmem:[#allocation16_spill] sm:$0xff] }
  0x89   : > { %6522 = vst [vmem:[#allocation24_spill] sm:$0xff] %v5535_v28  ;;  %4263 = vmatmul.mubr.msk.bf16.gmra.mxu1 %vm348_vm1, %v5535_v28  ;;  %v2114_v32 = vshrl.u32 %v5545_v34, 16  ;;  %v2110_v1 = vshll.u32 %v5545_v34, 16  ;;  %v2103_v10 = vrot.slane %v2101_v24, 4  ;;  %v6537_v24 = vld [vmem:[#allocation22_spill] sm:$0xff] }
  0x8a   : > { %6523 = vst [vmem:[#allocation26_spill] sm:$0xff] %v5539_v18  ;;  %4297 = vmatmul.mubr.msk.bf16.gmra.mxu0 %vm348_vm1, %v5539_v18  ;;  %4302 = vmatprep.mubr.msk.bf16.mxu1 %vm348_vm1, %v6524_v4  ;;  %v2399_v46 = vsel %vm5037_vm7, %v2397_v15, %v2398_v62  ;;  %v2106_v44 = vrot.slane %v2104_v52, 5  ;;  %v6536_v4 = vld [vmem:[#allocation17_spill] sm:$0xff]  ;;  %v2120_v15 = vshll.u32 %v263_v35, 16 }
  0x8b   : > { %4336 = vmatprep.mubr.msk.bf16.mxu0 %vm348_vm1, %v5162_v55  ;;  %v5562_v54 = vcombine.low %v2396_v20, %v2399_v46  ;;  %v4000_v55 = vld [vmem:[%s6409_s1 + $0xe] sm:$0x3]  ;;  %v2112_v36 = vrot.slane %v2110_v1, 5  ;;  %v2116_v37 = vrot.slane %v2114_v32, 4  ;;  %v5642_v32 = vcombine.low %v5542_v23, %v5545_v34 }
  0x8c   : > { %v2107_v62 = vor.u32 %v2106_v44, %v2103_v10  ;;  %v2969_v10 = vsel %vm397_vm0, %v4000_v55, 0  ;;  %v3245_v44 = vsel %vm397_vm0, %v4018_v42, 0 }
  0x8d   : > { %6525 = vst [vmem:[#allocation11_spill] sm:$0xff] %v5562_v54  ;;  %v2117_v20 = vor.u32 %v2116_v37, %v2112_v36 }
  0x8e   : > { %v2108_v46 = vrot.slane %v2107_v62, 4 }
  0x90   : > { %v2113_v52 = vsel %vm5012_vm6, %v2108_v46, %v2112_v36 }
  0x91   : > { %4303 = vmatmul.mubr.msk.bf16.vlgmr.msra.gmra.mxu1 %vm348_vm1, %v6526_v50 }
  0x92   : > { %4369 = vmatpush3.bf16.msra.mxu1 %v2407_v7  ;;  %4337 = vmatmul.mubr.msk.bf16.vlgmr.msra.gmra.mxu0 %vm348_vm1, %v5183_v58  ;;  %v2118_v7 = vrot.slane %v2117_v20, 4 }
  0x93   : > { %4306 = vmatprep.mubr.msk.bf16.mxu1 %vm348_vm1, %v6527_v14  ;;  %4403 = vmatpush3.bf16.msra.mxu0 %v2677_v11  ;;  %v2122_v11 = vrot.slane %v2120_v15, 5 }
  0x94   : > { %4340 = vmatprep.mubr.msk.bf16.mxu0 %vm348_vm1, %v5223_v8  ;;  %4514 = vmatprep.subr.msk.bf16.mxu1 %vm397_vm0, %v4000_v55 }
  0x95   : > { %4515 = vmatprep.subr.msk.bf16.mxu0 %vm397_vm0, %v4018_v42  ;;  %v2123_v35 = vsel %vm5012_vm6, %v2118_v7, %v2122_v11 }
  0x96   : > { %v5644_v1 = vcombine.low %v2113_v52, %v2123_v35  ;;  %v5753_v35 = vld [vmem:[%s4811_s22 + $0xcc] sm:$0xf] }
  0x98   : > { %6538 = vst [vmem:[#allocation14_spill] sm:$0xff] %v5644_v1 }
  0x99   : > { %4307 = vmatmul.mubr.msk.bf16.gmra.mxu1 %vm348_vm1, %v6528_v29 }
  0x9a   : > { %4341 = vmatmul.mubr.msk.bf16.gmra.mxu0 %vm348_vm1, %v5253_v30  ;;  %4310 = vmatprep.mubr.msk.bf16.mxu1 %vm348_vm1, %v6529_v61 }
  0x9b   : > { %4344 = vmatprep.mubr.msk.bf16.mxu0 %vm348_vm1, %v5278_v43 }
  0xa1   : > { %4311 = vmatmul.mubr.msk.bf16.gmra.mxu1 %vm348_vm1, %v6530_v21 }
  0xa2   : > { %4345 = vmatmul.mubr.msk.bf16.gmra.mxu0 %vm348_vm1, %v5313_v16  ;;  %4314 = vmatprep.mubr.msk.bf16.mxu1 %vm348_vm1, %v5124_v38 }
  0xa3   : > { %4348 = vmatprep.mubr.msk.bf16.mxu0 %vm348_vm1, %v5336_v19 }
  0xa9   : > { %4315 = vmatmul.mubr.msk.bf16.gmra.mxu1 %vm348_vm1, %v6531_v47 }
  0xaa   : > { %4349 = vmatmul.mubr.msk.bf16.gmra.mxu0 %vm348_vm1, %v5362_v5  ;;  %4318 = vmatprep.mubr.msk.bf16.mxu1 %vm348_vm1, %v6532_v0 }
  0xab   : > { %4352 = vmatprep.mubr.msk.bf16.mxu0 %vm348_vm1, %v5394_v63 }
  0xb1   : > { %4319 = vmatmul.mubr.msk.bf16.gmra.mxu1 %vm348_vm1, %v6533_v31 }
  0xb2   : > { %4353 = vmatmul.mubr.msk.bf16.gmra.mxu0 %vm348_vm1, %v5422_v59  ;;  %4322 = vmatprep.mubr.msk.bf16.mxu1 %vm348_vm1, %v6534_v2 }
  0xb3   : > { %4356 = vmatprep.mubr.msk.bf16.mxu0 %vm348_vm1, %v5444_v12 }
  0xb9   : > { %4323 = vmatmul.mubr.msk.bf16.gmra.mxu1 %vm348_vm1, %v6535_v49 }
  0xba   : > { %4357 = vmatmul.mubr.msk.bf16.gmra.mxu0 %vm348_vm1, %v5470_v33  ;;  %4326 = vmatprep.mubr.msk.bf16.mxu1 %vm348_vm1, %v6536_v4 }
  0xbb   : > { %4360 = vmatprep.mubr.msk.bf16.mxu0 %vm348_vm1, %v5490_v60 }
  0xc1   : > { %4327 = vmatmul.mubr.msk.bf16.gmra.mxu1 %vm348_vm1, %v6537_v24 }
  0xc2   : > { %4361 = vmatmul.mubr.msk.bf16.gmra.mxu0 %vm348_vm1, %v5521_v26  ;;  %4330 = vmatprep.mubr.msk.bf16.mxu1 %vm348_vm1, %v5091_v45 }
  0xc3   : > { %4364 = vmatprep.mubr.msk.bf16.mxu0 %vm348_vm1, %v5535_v28 }
  0xc9   : > { %4331 = vmatmul.mubr.msk.bf16.gmra.mxu1 %vm348_vm1, %v5642_v32 }
  0xca   : > { %4365 = vmatmul.mubr.msk.bf16.gmra.mxu0 %vm348_vm1, %v5644_v1  ;;  %4370 = vmatprep.mubr.msk.bf16.mxu1 %vm348_vm1, %v5152_v56 }
  0xcb   : > { %4404 = vmatprep.mubr.msk.bf16.mxu0 %vm348_vm1, %v6526_v50 }
  0xd1   : > { %4371 = vmatmul.mubr.msk.bf16.vlgmr.msra.gmra.mxu1 %vm348_vm1, %v5211_v53 }
  0xd2   : > { %4437 = vmatpush3.bf16.msra.mxu1 %v2969_v10  ;;  %4405 = vmatmul.mubr.msk.bf16.vlgmr.msra.gmra.mxu0 %vm348_vm1, %v6527_v14  ;;  %v5756_v10 = vld [vmem:[%s4811_s22 + $0xd0] sm:$0xf] }
  0xd3   : > { %4374 = vmatprep.mubr.msk.bf16.mxu1 %vm348_vm1, %v5225_v6  ;;  %4471 = vmatpush3.bf16.msra.mxu0 %v3245_v44 }
  0xd4   : > { %4408 = vmatprep.mubr.msk.bf16.mxu0 %vm348_vm1, %v6528_v29 }
  0xd9   : > { %4375 = vmatmul.mubr.msk.bf16.gmra.mxu1 %vm348_vm1, %v5262_v22 }
  0xda   : > { %4409 = vmatmul.mubr.msk.bf16.gmra.mxu0 %vm348_vm1, %v6529_v61  ;;  %4378 = vmatprep.mubr.msk.bf16.mxu1 %vm348_vm1, %v5286_v51 }
  0xdb   : > { %4412 = vmatprep.mubr.msk.bf16.mxu0 %vm348_vm1, %v6530_v21 }
  0xe0   : > { %v5680_v56 = vpop.f32.mrf.mxu1 }
  0xe1   : > { %4379 = vmatmul.mubr.msk.bf16.gmra.mxu1 %vm348_vm1, %v5319_v40 }
  0xe2   : > { %4413 = vmatmul.mubr.msk.bf16.gmra.mxu0 %vm348_vm1, %v5124_v38  ;;  %4382 = vmatprep.mubr.msk.bf16.mxu1 %vm348_vm1, %v5345_v9  ;;  %v5682_v23 = vpop.f32.mrf.mxu1 }
  0xe3   : > { %4416 = vmatprep.mubr.msk.bf16.mxu0 %vm348_vm1, %v6531_v47 }
  0xe4   : > { %v4202_v34 = vpop.f32.mrf.mxu0  ;;  %v5686_v50 = vpop.f32.mrf.mxu1 }
  0xe6   : > { %v435_v38 = vpop.f32.mrf.mxu0  ;;  %v5694_v55 = vpop.f32.mrf.mxu1 }
  0xe8   : > { %v4203_v42 = vpop.f32.mrf.mxu0 }
  0xe9   : > { %4383 = vmatmul.mubr.msk.bf16.gmra.mxu1 %vm348_vm1, %v5370_v13  ;;  %v5696_v29 = vpop.f32.mrf.mxu1 }
  0xea   : > { %4417 = vmatmul.mubr.msk.bf16.gmra.mxu0 %vm348_vm1, %v6532_v0  ;;  %4386 = vmatprep.mubr.msk.bf16.mxu1 %vm348_vm1, %v5396_v27  ;;  %v438_v14 = vpop.f32.mrf.mxu0 }
  0xeb   : > { %4420 = vmatprep.mubr.msk.bf16.mxu0 %vm348_vm1, %v6533_v31  ;;  %v5704_v61 = vpop.f32.mrf.mxu1 }
  0xec   : > { %v4206_v21 = vpop.f32.mrf.mxu0 }
  0xed   : > { %v5708_v47 = vpop.f32.mrf.mxu1 }
  0xee   : > { %v451_v0 = vpop.f32.mrf.mxu0 }
  0xef   : > { %v5710_v31 = vpop.f32.mrf.mxu1 }
  0xf0   : > { %v4207_v36 = vpop.f32.mrf.mxu0 }
  0xf1   : > { %4387 = vmatmul.mubr.msk.bf16.gmra.mxu1 %vm348_vm1, %v5424_v39  ;;  %v5712_v37 = vpop.f32.mrf.mxu1 }
  0xf2   : > { %4421 = vmatmul.mubr.msk.bf16.gmra.mxu0 %vm348_vm1, %v6534_v2  ;;  %4390 = vmatprep.mubr.msk.bf16.mxu1 %vm348_vm1, %v5448_v25  ;;  %6539 = vst [vmem:[#allocation15_spill] sm:$0xff] %v5712_v37  ;;  %v5714_v62 = vpop.f32.mrf.mxu0 }
  0xf3   : > { %4424 = vmatprep.mubr.msk.bf16.mxu0 %vm348_vm1, %v6535_v49  ;;  %v5722_v2 = vpop.f32.mrf.mxu1 }
  0xf4   : > { %6540 = vst [vmem:[#allocation19_spill] sm:$0xff] %v5722_v2  ;;  %v5724_v49 = vpop.f32.mrf.mxu0 }
  0xf5   : > { %v5728_v20 = vpop.f32.mrf.mxu1 }
  0xf6   : > { %6541 = vst [vmem:[#allocation21_spill] sm:$0xff] %v5728_v20  ;;  %v5730_v15 = vpop.f32.mrf.mxu0 }
  0xf7   : > { %v5732_v46 = vpop.f32.mrf.mxu1 }
  0xf8   : > { %6542 = vst [vmem:[#allocation25_spill] sm:$0xff] %v5732_v46  ;;  %v5734_v7 = vpop.f32.mrf.mxu0 }
  0xf9   : > { %4391 = vmatmul.mubr.msk.bf16.gmra.mxu1 %vm348_vm1, %v5476_v17 }
  0xfa   : > { %4425 = vmatmul.mubr.msk.bf16.gmra.mxu0 %vm348_vm1, %v6536_v4  ;;  %4394 = vmatprep.mubr.msk.bf16.mxu1 %vm348_vm1, %v5498_v57  ;;  %v5736_v4 = vpop.f32.mrf.mxu1  ;;  %v5738_v11 = vpop.f32.mrf.mxu0 }
  0xfb   : > { %4428 = vmatprep.mubr.msk.bf16.mxu0 %vm348_vm1, %v6537_v24  ;;  %6543 = vst [vmem:[#allocation9_spill] sm:$0xff] %v5736_v4 }
  0xfc   : > { %v5746_v24 = vpop.f32.mrf.mxu1  ;;  %v5748_v52 = vpop.f32.mrf.mxu0 }
  0xfd   : > { %6544 = vst [vmem:[#allocation10_spill] sm:$0xff] %v5746_v24 }
  0xfe   : > { %v5758_v44 = vpop.f32.mrf.mxu1  ;;  %v5760_v4 = vpop.f32.mrf.mxu0 }
  0xff   : > { %6545 = vst [vmem:[#allocation12_spill] sm:$0xff] %v5758_v44 }
 0x100   : > { %v5764_v46 = vpop.f32.mrf.mxu1  ;;  %v5766_v41 = vpop.f32.mrf.mxu0 }
 0x101   : > { %4395 = vmatmul.mubr.msk.bf16.gmra.mxu1 %vm348_vm1, %v5525_v48  ;;  %6546 = vst [vmem:[#allocation13_spill] sm:$0xff] %v5764_v46 }
 0x102   : > { %4429 = vmatmul.mubr.msk.bf16.gmra.mxu0 %vm348_vm1, %v5091_v45  ;;  %4398 = vmatprep.mubr.msk.bf16.mxu1 %vm348_vm1, %v5539_v18  ;;  %v3983_v45 = vcombine.low %v5753_v35, %v5756_v10  ;;  %v4236_v24 = vpop.f32.mrf.mxu1  ;;  %v5768_v20 = vpop.f32.mrf.mxu0 }
 0x103   : > { %4432 = vmatprep.mubr.msk.bf16.mxu0 %vm348_vm1, %v5642_v32  ;;  %v1277_v32 = vadd.f32 %v4236_v24, %v4202_v34 }
 0x104   : > { %v1116_v44 = vpop.f32.mrf.mxu1  ;;  %v4270_v3 = vpop.f32.mrf.mxu0 }
 0x105   : > { %v1275_v1 = vadd.f32 %v1116_v44, %v435_v38  ;;  %v5777_v46 = vadd.f32 %v4270_v3, %v1277_v32 }
 0x106   : > { %v4237_v18 = vpop.f32.mrf.mxu1  ;;  %v1605_v2 = vpop.f32.mrf.mxu0 }
 0x107   : > { %v1278_v28 = vadd.f32 %v4237_v18, %v4203_v42  ;;  %v5779_v37 = vadd.f32 %v1605_v2, %v1275_v1 }
 0x108   : > { %v4271_v34 = vpop.f32.mrf.mxu0 }
 0x109   : > { %4399 = vmatmul.mubr.msk.bf16.gmra.mxu1 %vm348_vm1, %v5562_v54  ;;  %v1119_v54 = vpop.f32.mrf.mxu1 }
 0x10a   : > { %4433 = vmatmul.mubr.msk.bf16.gmra.mxu0 %vm348_vm1, %v3983_v45  ;;  %4438 = vmatprep.mubr.msk.bf16.mxu1 %vm348_vm1, %v5183_v58  ;;  %v1276_v24 = vadd.f32 %v1119_v54, %v438_v14  ;;  %v5781_v45 = vadd.f32 %v4271_v34, %v1278_v28  ;;  %v1608_v58 = vpop.f32.mrf.mxu0 }
 0x10b   : > { %4472 = vmatprep.mubr.msk.bf16.mxu0 %vm348_vm1, %v5211_v53  ;;  %v4240_v48 = vpop.f32.mrf.mxu1 }
 0x10c   : > { %v1281_v38 = vadd.f32 %v4240_v48, %v4206_v21  ;;  %v5785_v44 = vadd.f32 %v1608_v58, %v1276_v24  ;;  %v4274_v53 = vpop.f32.mrf.mxu0 }
 0x10d   : > { %v1132_v3 = vpop.f32.mrf.mxu1 }
 0x10e   : > { %v1279_v18 = vadd.f32 %v1132_v3, %v451_v0  ;;  %v5793_v28 = vadd.f32 %v4274_v53, %v1281_v38  ;;  %v1621_v1 = vpop.f32.mrf.mxu0 }
 0x10f   : > { %v4241_v54 = vpop.f32.mrf.mxu1 }
 0x110   : > { %v5795_v48 = vadd.f32 %v1621_v1, %v1279_v18  ;;  %v4275_v14 = vpop.f32.mrf.mxu0 }
 0x111   : > { %4439 = vmatmul.mubr.msk.bf16.vlgmr.msra.gmra.mxu1 %vm348_vm1, %v5223_v8  ;;  %v1282_v8 = vadd.f32 %v4241_v54, %v4207_v36  ;;  %v1135_v42 = vpop.f32.mrf.mxu1 }
 0x112   : > { %4473 = vmatmul.mubr.msk.bf16.vlgmr.msra.gmra.mxu0 %vm348_vm1, %v5225_v6  ;;  %4442 = vmatprep.mubr.msk.bf16.mxu1 %vm348_vm1, %v5253_v30  ;;  %v1280_v6 = vadd.f32 %v1135_v42, %v5714_v62  ;;  %v1624_v2 = vpop.f32.mrf.mxu0 }
 0x113   : > { %4476 = vmatprep.mubr.msk.bf16.mxu0 %vm348_vm1, %v5262_v22  ;;  %v5798_v21 = vadd.f32 %v4275_v14, %v1282_v8  ;;  %v4244_v30 = vpop.f32.mrf.mxu1 }
 0x114   : > { %v1285_v22 = vadd.f32 %v4244_v30, %v5724_v49  ;;  %v5803_v0 = vadd.f32 %v1624_v2, %v1280_v6  ;;  %v4278_v32 = vpop.f32.mrf.mxu0 }
 0x115   : > { %v1148_v36 = vpop.f32.mrf.mxu1 }
 0x116   : > { %v1283_v62 = vadd.f32 %v1148_v36, %v5730_v15  ;;  %v5812_v34 = vadd.f32 %v4278_v32, %v1285_v22  ;;  %v1637_v24 = vpop.f32.mrf.mxu0 }
 0x118   : > { %v5815_v58 = vadd.f32 %v1637_v24, %v1283_v62 }
 0x119   : > { %4443 = vmatmul.mubr.msk.bf16.gmra.mxu1 %vm348_vm1, %v5278_v43  ;;  %v4245_v43 = vpop.f32.mrf.mxu1 }
 0x11a   : > { %4477 = vmatmul.mubr.msk.bf16.gmra.mxu0 %vm348_vm1, %v5286_v51  ;;  %4446 = vmatprep.mubr.msk.bf16.mxu1 %vm348_vm1, %v5313_v16  ;;  %v1286_v49 = vadd.f32 %v4245_v43, %v5734_v7  ;;  %v4279_v51 = vpop.f32.mrf.mxu0 }
 0x11b   : > { %4480 = vmatprep.mubr.msk.bf16.mxu0 %vm348_vm1, %v5319_v40  ;;  %v1151_v38 = vpop.f32.mrf.mxu1 }
 0x11c   : > { %v1284_v3 = vadd.f32 %v1151_v38, %v5738_v11  ;;  %v5818_v16 = vadd.f32 %v4279_v51, %v1286_v49  ;;  %v1640_v53 = vpop.f32.mrf.mxu0  ;;  %v2939_v49 = vshrl.u32 %v5753_v35, 16  ;;  %v2948_v38 = vshll.u32 %v5756_v10, 16 }
 0x11d   : > { %v4248_v15 = vpop.f32.mrf.mxu1  ;;  %v2952_v51 = vshrl.u32 %v5756_v10, 16 }
 0x11e   : > { %v5822_v40 = vadd.f32 %v1640_v53, %v1284_v3  ;;  %v1289_v7 = vadd.f32 %v4248_v15, %v5748_v52  ;;  %v4282_v18 = vpop.f32.mrf.mxu0  ;;  %v2941_v53 = vrot.slane %v2939_v49, 4 }
 0x11f   : > { %v1164_v54 = vpop.f32.mrf.mxu1 }
 0x120   : > { %v1287_v11 = vadd.f32 %v1164_v54, %v5760_v4  ;;  %v5832_v1 = vadd.f32 %v4282_v18, %v1289_v7  ;;  %v2950_v7 = vrot.slane %v2948_v38, 5  ;;  %v2954_v18 = vrot.slane %v2952_v51, 4 }
 0x121   : > { %4447 = vmatmul.mubr.msk.bf16.gmra.mxu1 %vm348_vm1, %v5336_v19  ;;  %v1653_v19 = vpop.f32.mrf.mxu0  ;;  %v4249_v8 = vpop.f32.mrf.mxu1 }
 0x122   : > { %4481 = vmatmul.mubr.msk.bf16.gmra.mxu0 %vm348_vm1, %v5345_v9  ;;  %4450 = vmatprep.mubr.msk.bf16.mxu1 %vm348_vm1, %v5362_v5  ;;  %v1290_v42 = vadd.f32 %v4249_v8, %v5766_v41  ;;  %v5835_v14 = vadd.f32 %v1653_v19, %v1287_v11 }
 0x123   : > { %4484 = vmatprep.mubr.msk.bf16.mxu0 %vm348_vm1, %v5370_v13  ;;  %v4283_v9 = vpop.f32.mrf.mxu0  ;;  %v1167_v6 = vpop.f32.mrf.mxu1 }
 0x124   : > { %v1288_v5 = vadd.f32 %v1167_v6, %v5768_v20  ;;  %v5838_v52 = vadd.f32 %v4283_v9, %v1290_v42  ;;  %v2955_v6 = vor.u32 %v2954_v18, %v2950_v7 }
 0x125   : > { %v1656_v30 = vpop.f32.mrf.mxu0 }
 0x126   : > { %v4252_v13 = vpop.f32.mrf.mxu1  ;;  %v5846_v41 = vadd.f32 %v1656_v30, %v1288_v5  ;;  %v3233_v30 = vrot.slane %v5756_v10, 5 }
 0x127   : > { %v4286_v4 = vpop.f32.mrf.mxu0  ;;  %v1293_v2 = vadd.f32 %v4252_v13, %v5680_v56 }
 0x128   : > { %v1180_v20 = vpop.f32.mrf.mxu1  ;;  %v3235_v10 = vrot.slane %v3233_v30, 4 }
 0x129   : > { %4451 = vmatmul.mubr.msk.bf16.gmra.mxu1 %vm348_vm1, %v5394_v63  ;;  %v1669_v22 = vpop.f32.mrf.mxu0  ;;  %v1291_v36 = vadd.f32 %v1180_v20, %v5682_v23  ;;  %v5852_v63 = vadd.f32 %v4286_v4, %v1293_v2  ;;  %v2942_v23 = vshll.u32 %v5753_v35, 16  ;;  %v6547_v4 = vld [vmem:[#allocation23_spill] sm:$0xff] }
 0x12a   : > { %4485 = vmatmul.mubr.msk.bf16.gmra.mxu0 %vm348_vm1, %v5396_v27  ;;  %4454 = vmatprep.mubr.msk.bf16.mxu1 %vm348_vm1, %v5422_v59  ;;  %v4253_v32 = vpop.f32.mrf.mxu1 }
 0x12b   : > { %4488 = vmatprep.mubr.msk.bf16.mxu0 %vm348_vm1, %v5424_v39  ;;  %v4287_v27 = vpop.f32.mrf.mxu0  ;;  %v1294_v62 = vadd.f32 %v4253_v32, %v5686_v50  ;;  %v5855_v59 = vadd.f32 %v1669_v22, %v1291_v36  ;;  %v2944_v15 = vrot.slane %v2942_v23, 5  ;;  %v2956_v22 = vrot.slane %v2955_v6, 4  ;;  %v6548_v32 = vld [vmem:[#allocation15_spill] sm:$0xff] }
 0x12c   : > { %v1183_v43 = vpop.f32.mrf.mxu1 }
 0x12d   : > { %v1292_v56 = vadd.f32 %v1183_v43, %v5694_v55  ;;  %v5860_v24 = vadd.f32 %v4287_v27, %v1294_v62  ;;  %v1672_v39 = vpop.f32.mrf.mxu0 }
 0x131   : > { %4455 = vmatmul.mubr.msk.bf16.gmra.mxu1 %vm348_vm1, %v5444_v12  ;;  %v5870_v12 = vadd.f32 %v1672_v39, %v1292_v56  ;;  %v6549_v56 = vld [vmem:[#allocation24_spill] sm:$0xff]  ;;  %v6550_v39 = vld [vmem:[#allocation19_spill] sm:$0xff] }
 0x132   : > { %4489 = vmatmul.mubr.msk.bf16.gmra.mxu0 %vm348_vm1, %v5448_v25  ;;  %4458 = vmatprep.mubr.msk.bf16.mxu1 %vm348_vm1, %v5470_v33  ;;  %v4256_v50 = vpop.f32.mrf.mxu1  ;;  %v266_v33 = vld [vmem:[%s4811_s22 + $0xd4] sm:$0x1]  ;;  %s6294_s22 = scalar_lea.hbm %s6410_s2, %s4044_s11 }
 0x133   : > { %4492 = vmatprep.mubr.msk.bf16.mxu0 %vm348_vm1, %v5476_v17  ;;  %v1297_v55 = vadd.f32 %v4256_v50, %v5696_v29  ;;  %v4290_v3 = vpop.f32.mrf.mxu0  ;;  %v2958_v5 = vshll.u32 %v266_v33, 16  ;;  %v3236_v43 = vrot.slane %v266_v33, 5  ;;  %v6551_v50 = vld [vmem:[#allocation26_spill] sm:$0xff] }
 0x134   : > { %v1196_v54 = vpop.f32.mrf.mxu1 }
 0x135   : > { %v1295_v11 = vadd.f32 %v1196_v54, %v5704_v61  ;;  %v5876_v25 = vadd.f32 %v4290_v3, %v1297_v55  ;;  %v1685_v19 = vpop.f32.mrf.mxu0  ;;  %v2945_v61 = vor.u32 %v2944_v15, %v2941_v53  ;;  %v2960_v36 = vrot.slane %v2958_v5, 5  ;;  %v6552_v55 = vld [vmem:[#allocation14_spill] sm:$0xff]  ;;  %v6554_v15 = vld [vmem:[#allocation21_spill] sm:$0xff] }
 0x136   : > { %v4257_v8 = vpop.f32.mrf.mxu1 }
 0x137   : > { %v1298_v17 = vadd.f32 %v4257_v8, %v5708_v47  ;;  %v5882_v42 = vadd.f32 %v1685_v19, %v1295_v11  ;;  %v4291_v29 = vpop.f32.mrf.mxu0  ;;  %v2946_v20 = vrot.slane %v2945_v61, 4  ;;  %v2961_v53 = vsel %vm5012_vm6, %v2956_v22, %v2960_v36  ;;  %v6555_v19 = vld [vmem:[#allocation11_spill] sm:$0xff]  ;;  %v6559_v36 = vld [vmem:[#allocation10_spill] sm:$0xff] }
 0x138   : > { %v1199_v9 = vpop.f32.mrf.mxu1 }
 0x139   : > { %4459 = vmatmul.mubr.msk.bf16.gmra.mxu1 %vm348_vm1, %v5490_v60  ;;  %v1296_v13 = vadd.f32 %v1199_v9, %v5710_v31  ;;  %v5890_v60 = vadd.f32 %v4291_v29, %v1298_v17  ;;  %v1688_v47 = vpop.f32.mrf.mxu0  ;;  %v2951_v3 = vsel %vm5012_vm6, %v2946_v20, %v2950_v7  ;;  %v3237_v17 = vsel %vm5037_vm7, %v3235_v10, %v3236_v43  ;;  %v6557_v9 = vld [vmem:[#allocation25_spill] sm:$0xff]  ;;  %v6560_v10 = vld [vmem:[#allocation12_spill] sm:$0xff] }
 0x13a   : > { %4493 = vmatmul.mubr.msk.bf16.gmra.mxu0 %vm348_vm1, %v5498_v57  ;;  %4462 = vmatprep.mubr.msk.bf16.mxu1 %vm348_vm1, %v5521_v26  ;;  %v4019_v26 = vrot.slane %v5753_v35, 9  ;;  %v4001_v6 = vcombine.low %v2951_v3, %v2961_v53 }
 0x13b   : > { %4496 = vmatprep.mubr.msk.bf16.mxu0 %vm348_vm1, %v6547_v4  ;;  %v5894_v2 = vadd.f32 %v1688_v47, %v1296_v13 }
 0x13c   : > { %v3234_v8 = vsel %vm5037_vm7, %v4019_v26, %v3233_v30 }
 0x13d   : > { %v4260_v57 = vpop.f32.mrf.mxu1  ;;  %v4020_v13 = vcombine.low %v3234_v8, %v3237_v17 }
 0x13e   : > { %v1301_v27 = vadd.f32 %v4260_v57, %v6548_v32  ;;  %v4294_v62 = vpop.f32.mrf.mxu0  ;;  %v6558_v57 = vld [vmem:[#allocation9_spill] sm:$0xff] }
 0x13f   : > { %v1212_v31 = vpop.f32.mrf.mxu1 }
 0x140   : > { %v1299_v49 = vadd.f32 %v1212_v31, %v6550_v39  ;;  %v5901_v23 = vadd.f32 %v4294_v62, %v1301_v27  ;;  %v1701_v38 = vpop.f32.mrf.mxu0 }
 0x141   : > { %4463 = vmatmul.mubr.msk.bf16.gmra.mxu1 %vm348_vm1, %v6549_v56  ;;  %v4261_v51 = vpop.f32.mrf.mxu1 }
 0x142   : > { %4497 = vmatmul.mubr.msk.bf16.gmra.mxu0 %vm348_vm1, %v6551_v50  ;;  %4466 = vmatprep.mubr.msk.bf16.mxu1 %vm348_vm1, %v6552_v55  ;;  %v1302_v18 = vadd.f32 %v4261_v51, %v6554_v15  ;;  %v5912_v54 = vadd.f32 %v1701_v38, %v1299_v49  ;;  %v4295_v11 = vpop.f32.mrf.mxu0  ;;  %v6561_v49 = vld [vmem:[#allocation13_spill] sm:$0xff] }
 0x143   : > { %4500 = vmatprep.mubr.msk.bf16.mxu0 %vm348_vm1, %v6555_v19  ;;  %v1215_v29 = vpop.f32.mrf.mxu1 }
 0x144   : > { %v1300_v7 = vadd.f32 %v1215_v29, %v6557_v9  ;;  %v5921_v61 = vadd.f32 %v4295_v11, %v1302_v18  ;;  %v1704_v5 = vpop.f32.mrf.mxu0 }
 0x146   : > { %v5923_v47 = vadd.f32 %v1704_v5, %v1300_v7 }
 0x149   : > { %v4264_v4 = vpop.f32.mrf.mxu1  ;;  %4467 = vmatmul.mubr.msk.bf16.gmra.mxu1 %vm348_vm1, %v4001_v6 }
 0x14a   : > { %v1305_v20 = vadd.f32 %v4264_v4, %v6558_v57  ;;  %v4298_v22 = vpop.f32.mrf.mxu0  ;;  %4501 = vmatmul.mubr.msk.bf16.gmra.mxu0 %vm348_vm1, %v4020_v13 }
 0x14b   : > { %v1228_v30 = vpop.f32.mrf.mxu1 }
 0x14c   : > { %v1303_v26 = vadd.f32 %v1228_v30, %v6559_v36  ;;  %v5929_v32 = vadd.f32 %v4298_v22, %v1305_v20  ;;  %v1717_v27 = vpop.f32.mrf.mxu0 }
 0x14d   : > { %v4265_v62 = vpop.f32.mrf.mxu1 }
 0x14e   : > { %v1306_v43 = vadd.f32 %v4265_v62, %v6560_v10  ;;  %v5932_v31 = vadd.f32 %v1717_v27, %v1303_v26  ;;  %v4299_v56 = vpop.f32.mrf.mxu0 }
 0x14f   : > { %v1231_v39 = vpop.f32.mrf.mxu1 }
 0x150   : > { %v1304_v38 = vadd.f32 %v1231_v39, %v6561_v49  ;;  %v5935_v51 = vadd.f32 %v4299_v56, %v1306_v43  ;;  %v1720_v50 = vpop.f32.mrf.mxu0 }
 0x151   : > { %v4304_v55 = vpop.f32.mrf.mxu1 }
 0x152   : > { %v2036_v35 = vadd.f32 %v4304_v55, %v5777_v46  ;;  %v5938_v3 = vadd.f32 %v1720_v50, %v1304_v38  ;;  %v4338_v53 = vpop.f32.mrf.mxu0 }
 0x153   : > { %v1875_v15 = vpop.f32.mrf.mxu1 }
 0x154   : > { %v2034_v18 = vadd.f32 %v1875_v15, %v5779_v37  ;;  %v5941_v11 = vadd.f32 %v4338_v53, %v2036_v35  ;;  %v2167_v19 = vpop.f32.mrf.mxu0 }
 0x155   : > { %v4305_v33 = vpop.f32.mrf.mxu1 }
 0x156   : > { %v2037_v8 = vadd.f32 %v4305_v33, %v5781_v45  ;;  %v5944_v17 = vadd.f32 %v2167_v19, %v2034_v18  ;;  %v4339_v29 = vpop.f32.mrf.mxu0 }
 0x157   : > { %v1878_v9 = vpop.f32.mrf.mxu1 }
 0x158   : > { %v2035_v7 = vadd.f32 %v1878_v9, %v5785_v44  ;;  %v5947_v6 = vadd.f32 %v4339_v29, %v2037_v8  ;;  %v2170_v46 = vpop.f32.mrf.mxu0 }
 0x159   : > { %v4308_v5 = vpop.f32.mrf.mxu1 }
 0x15a   : > { %v2040_v13 = vadd.f32 %v4308_v5, %v5793_v28  ;;  %v5950_v4 = vadd.f32 %v2170_v46, %v2035_v7  ;;  %v4342_v37 = vpop.f32.mrf.mxu0 }
 0x15b   : > { %v1891_v57 = vpop.f32.mrf.mxu1 }
 0x15c   : > { %v2038_v20 = vadd.f32 %v1891_v57, %v5795_v48  ;;  %v5953_v22 = vadd.f32 %v4342_v37, %v2040_v13  ;;  %v2183_v45 = vpop.f32.mrf.mxu0 }
 0x15d   : > { %v4309_v30 = vpop.f32.mrf.mxu1 }
 0x15e   : > { %v2041_v36 = vadd.f32 %v4309_v30, %v5798_v21  ;;  %v5956_v26 = vadd.f32 %v2183_v45, %v2038_v20  ;;  %v4343_v44 = vpop.f32.mrf.mxu0 }
 0x15f   : > { %v1894_v27 = vpop.f32.mrf.mxu1 }
 0x160   : > { %v2039_v62 = vadd.f32 %v1894_v27, %v5803_v0  ;;  %v5959_v10 = vadd.f32 %v4343_v44, %v2041_v36  ;;  %v2186_v28 = vpop.f32.mrf.mxu0 }
 0x161   : > { %v4312_v43 = vpop.f32.mrf.mxu1 }
 0x162   : > { %v2044_v56 = vadd.f32 %v4312_v43, %v5812_v34  ;;  %v5962_v39 = vadd.f32 %v2186_v28, %v2039_v62  ;;  %v4346_v48 = vpop.f32.mrf.mxu0 }
 0x163   : > { %v1907_v49 = vpop.f32.mrf.mxu1 }
 0x164   : > { %v2042_v38 = vadd.f32 %v1907_v49, %v5815_v58  ;;  %v5965_v50 = vadd.f32 %v4346_v48, %v2044_v56  ;;  %v2199_v21 = vpop.f32.mrf.mxu0 }
 0x165   : > { %v4313_v55 = vpop.f32.mrf.mxu1 }
 0x166   : > { %v2045_v35 = vadd.f32 %v4313_v55, %v5818_v16  ;;  %v5968_v53 = vadd.f32 %v2199_v21, %v2042_v38  ;;  %v4347_v0 = vpop.f32.mrf.mxu0 }
 0x167   : > { %v1910_v15 = vpop.f32.mrf.mxu1 }
 0x168   : > { %v2043_v18 = vadd.f32 %v1910_v15, %v5822_v40  ;;  %v5971_v19 = vadd.f32 %v4347_v0, %v2045_v35  ;;  %v2202_v34 = vpop.f32.mrf.mxu0 }
 0x169   : > { %v4316_v33 = vpop.f32.mrf.mxu1 }
 0x16a   : > { %v2048_v8 = vadd.f32 %v4316_v33, %v5832_v1  ;;  %v5974_v29 = vadd.f32 %v2202_v34, %v2043_v18  ;;  %v4350_v58 = vpop.f32.mrf.mxu0 }
 0x16b   : > { %v1923_v9 = vpop.f32.mrf.mxu1 }
 0x16c   : > { %v2046_v7 = vadd.f32 %v1923_v9, %v5835_v14  ;;  %v5977_v46 = vadd.f32 %v4350_v58, %v2048_v8  ;;  %v2215_v16 = vpop.f32.mrf.mxu0 }
 0x16d   : > { %v4317_v5 = vpop.f32.mrf.mxu1 }
 0x16e   : > { %v2049_v13 = vadd.f32 %v4317_v5, %v5838_v52  ;;  %v5980_v37 = vadd.f32 %v2215_v16, %v2046_v7  ;;  %v4351_v40 = vpop.f32.mrf.mxu0 }
 0x16f   : > { %v1926_v57 = vpop.f32.mrf.mxu1 }
 0x170   : > { %v2047_v20 = vadd.f32 %v1926_v57, %v5846_v41  ;;  %v5983_v45 = vadd.f32 %v4351_v40, %v2049_v13  ;;  %v2218_v1 = vpop.f32.mrf.mxu0 }
 0x171   : > { %v4320_v30 = vpop.f32.mrf.mxu1 }
 0x172   : > { %v2052_v36 = vadd.f32 %v4320_v30, %v5852_v63  ;;  %v5986_v44 = vadd.f32 %v2218_v1, %v2047_v20  ;;  %v4354_v14 = vpop.f32.mrf.mxu0 }
 0x173   : > { %v1939_v27 = vpop.f32.mrf.mxu1 }
 0x174   : > { %v2050_v62 = vadd.f32 %v1939_v27, %v5855_v59  ;;  %v5989_v28 = vadd.f32 %v4354_v14, %v2052_v36  ;;  %v2231_v52 = vpop.f32.mrf.mxu0 }
 0x175   : > { %v4321_v43 = vpop.f32.mrf.mxu1 }
 0x176   : > { %v2053_v56 = vadd.f32 %v4321_v43, %v5860_v24  ;;  %v5992_v48 = vadd.f32 %v2231_v52, %v2050_v62  ;;  %v4355_v41 = vpop.f32.mrf.mxu0 }
 0x177   : > { %v1942_v49 = vpop.f32.mrf.mxu1 }
 0x178   : > { %v2051_v38 = vadd.f32 %v1942_v49, %v5870_v12  ;;  %v5995_v21 = vadd.f32 %v4355_v41, %v2053_v56  ;;  %v2234_v63 = vpop.f32.mrf.mxu0 }
 0x179   : > { %v4324_v55 = vpop.f32.mrf.mxu1 }
 0x17a   : > { %v2056_v35 = vadd.f32 %v4324_v55, %v5876_v25  ;;  %v5998_v0 = vadd.f32 %v2234_v63, %v2051_v38  ;;  %v4358_v59 = vpop.f32.mrf.mxu0 }
 0x17b   : > { %v1955_v15 = vpop.f32.mrf.mxu1 }
 0x17c   : > { %6562 = vst [vmem:[#allocation16_spill] sm:$0xff] %v5998_v0  ;;  %v2054_v18 = vadd.f32 %v1955_v15, %v5882_v42  ;;  %v6001_v34 = vadd.f32 %v4358_v59, %v2056_v35  ;;  %v2247_v24 = vpop.f32.mrf.mxu0 }
 0x17d   : > { %v4325_v33 = vpop.f32.mrf.mxu1 }
 0x17e   : > { %6563 = vst [vmem:[#allocation17_spill] sm:$0xff] %v6001_v34  ;;  %v2057_v8 = vadd.f32 %v4325_v33, %v5890_v60  ;;  %v6004_v58 = vadd.f32 %v2247_v24, %v2054_v18  ;;  %v4359_v12 = vpop.f32.mrf.mxu0 }
 0x17f   : > { %v1958_v9 = vpop.f32.mrf.mxu1 }
 0x180   : > { %6564 = vst [vmem:[#allocation22_spill] sm:$0xff] %v6004_v58  ;;  %v2055_v7 = vadd.f32 %v1958_v9, %v5894_v2  ;;  %v6007_v16 = vadd.f32 %v4359_v12, %v2057_v8  ;;  %v2250_v25 = vpop.f32.mrf.mxu0 }
 0x181   : > { %v4328_v5 = vpop.f32.mrf.mxu1 }
 0x182   : > { %6565 = vst [vmem:[#allocation23_spill] sm:$0xff] %v6007_v16  ;;  %v2060_v13 = vadd.f32 %v4328_v5, %v5901_v23  ;;  %v6010_v40 = vadd.f32 %v2250_v25, %v2055_v7  ;;  %v4362_v42 = vpop.f32.mrf.mxu0 }
 0x183   : > { %v1971_v57 = vpop.f32.mrf.mxu1 }
 0x184   : > { %6566 = vst [vmem:[#allocation15_spill] sm:$0xff] %v6010_v40  ;;  %v2058_v20 = vadd.f32 %v1971_v57, %v5912_v54  ;;  %v6013_v1 = vadd.f32 %v4362_v42, %v2060_v13  ;;  %v2263_v60 = vpop.f32.mrf.mxu0 }
 0x185   : > { %v4329_v30 = vpop.f32.mrf.mxu1 }
 0x186   : > { %6567 = vst [vmem:[#allocation24_spill] sm:$0xff] %v6013_v1  ;;  %v2061_v36 = vadd.f32 %v4329_v30, %v5921_v61  ;;  %v6016_v14 = vadd.f32 %v2263_v60, %v2058_v20  ;;  %v4363_v2 = vpop.f32.mrf.mxu0 }
 0x187   : > { %v1974_v27 = vpop.f32.mrf.mxu1 }
 0x188   : > { %6568 = vst [vmem:[#allocation19_spill] sm:$0xff] %v6016_v14  ;;  %v2059_v62 = vadd.f32 %v1974_v27, %v5923_v47  ;;  %v6019_v52 = vadd.f32 %v4363_v2, %v2061_v36  ;;  %v2266_v23 = vpop.f32.mrf.mxu0 }
 0x189   : > { %v4332_v43 = vpop.f32.mrf.mxu1 }
 0x18a   : > { %6569 = vst [vmem:[#allocation26_spill] sm:$0xff] %v6019_v52  ;;  %v2064_v56 = vadd.f32 %v4332_v43, %v5929_v32  ;;  %v6022_v41 = vadd.f32 %v2266_v23, %v2059_v62  ;;  %v4366_v54 = vpop.f32.mrf.mxu0 }
 0x18b   : > { %v1987_v49 = vpop.f32.mrf.mxu1 }
 0x18c   : > { %6570 = vst [vmem:[#allocation14_spill] sm:$0xff] %v6022_v41  ;;  %v2062_v38 = vadd.f32 %v1987_v49, %v5932_v31  ;;  %v6025_v63 = vadd.f32 %v4366_v54, %v2064_v56  ;;  %v2279_v61 = vpop.f32.mrf.mxu0 }
 0x18d   : > { %v4333_v55 = vpop.f32.mrf.mxu1 }
 0x18e   : > { %6571 = vst [vmem:[#allocation18_spill] sm:$0xff] %v6025_v63  ;;  %v2065_v35 = vadd.f32 %v4333_v55, %v5935_v51  ;;  %v6028_v59 = vadd.f32 %v2279_v61, %v2062_v38  ;;  %v4367_v47 = vpop.f32.mrf.mxu0 }
 0x18f   : > { %v1990_v15 = vpop.f32.mrf.mxu1 }
 0x190   : > { %6572 = vst [vmem:[#allocation21_spill] sm:$0xff] %v6028_v59  ;;  %v2063_v18 = vadd.f32 %v1990_v15, %v5938_v3  ;;  %v6031_v24 = vadd.f32 %v4367_v47, %v2065_v35  ;;  %v2282_v32 = vpop.f32.mrf.mxu0 }
 0x191   : > { %v4372_v33 = vpop.f32.mrf.mxu1 }
 0x192   : > { %6573 = vst [vmem:[#allocation11_spill] sm:$0xff] %v6031_v24  ;;  %v6033_v8 = vadd.f32 %v2282_v32, %v2063_v18  ;;  %v6035_v12 = vpop.f32.mrf.mxu0 }
 0x193   : > { %v2443_v31 = vpop.f32.mrf.mxu1 }
 0x194   : > { %6574 = vst [vmem:[#allocation20_spill] sm:$0xff] %v6033_v8  ;;  %v6037_v9 = vpop.f32.mrf.mxu0 }
 0x195   : > { %v6039_v7 = vpop.f32.mrf.mxu1 }
 0x196   : > { %v6041_v51 = vpop.f32.mrf.mxu0 }
 0x197   : > { %v6043_v25 = vpop.f32.mrf.mxu1 }
 0x198   : > { %v6045_v5 = vpop.f32.mrf.mxu0 }
 0x199   : > { %v6047_v3 = vpop.f32.mrf.mxu1 }
 0x19a   : > { %v6049_v13 = vpop.f32.mrf.mxu0 }
 0x19b   : > { %v6051_v42 = vpop.f32.mrf.mxu1 }
 0x19c   : > { %v6053_v57 = vpop.f32.mrf.mxu0 }
 0x19d   : > { %v6055_v20 = vpop.f32.mrf.mxu1 }
 0x19e   : > { %v6057_v60 = vpop.f32.mrf.mxu0 }
 0x19f   : > { %v6059_v30 = vpop.f32.mrf.mxu1 }
 0x1a0   : > { %v6061_v36 = vpop.f32.mrf.mxu0 }
 0x1a1   : > { %v6063_v2 = vpop.f32.mrf.mxu1 }
 0x1a2   : > { %v6065_v27 = vpop.f32.mrf.mxu0 }
 0x1a3   : > { %v6067_v62 = vpop.f32.mrf.mxu1 }
 0x1a4   : > { %v6069_v23 = vpop.f32.mrf.mxu0 }
 0x1a5   : > { %v6071_v43 = vpop.f32.mrf.mxu1 }
 0x1a6   : > { %v6073_v56 = vpop.f32.mrf.mxu0 }
 0x1a7   : > { %v6075_v54 = vpop.f32.mrf.mxu1 }
 0x1a8   : > { %v6077_v49 = vpop.f32.mrf.mxu0 }
 0x1a9   : > { %v6079_v38 = vpop.f32.mrf.mxu1 }
 0x1aa   : > { %v6081_v61 = vpop.f32.mrf.mxu0 }
 0x1ab   : > { %v6083_v55 = vpop.f32.mrf.mxu1 }
 0x1ac   : > { %v6085_v35 = vpop.f32.mrf.mxu0 }
 0x1ad   : > { %v6087_v47 = vpop.f32.mrf.mxu1 }
 0x1ae   : > { %v6089_v15 = vpop.f32.mrf.mxu0 }
 0x1af   : > { %v6091_v18 = vpop.f32.mrf.mxu1 }
 0x1b0   : > { %v6093_v32 = vpop.f32.mrf.mxu0 }
 0x1b1   : > { %v6095_v8 = vpop.f32.mrf.mxu1 }
 0x1b2   : > { %v6097_v24 = vpop.f32.mrf.mxu0 }
 0x1b3   : > { %6575 = vst [vmem:[#allocation25_spill] sm:$0xff] %v6097_v24  ;;  %v6099_v59 = vpop.f32.mrf.mxu1 }
 0x1b4   : > { %v6101_v63 = vpop.f32.mrf.mxu0 }
 0x1b5   : > { %6576 = vst [vmem:[#allocation9_spill] sm:$0xff] %v6101_v63  ;;  %v6103_v41 = vpop.f32.mrf.mxu1 }
 0x1b6   : > { %6577 = vst [vmem:[#allocation10_spill] sm:$0xff] %v6103_v41  ;;  %v6105_v52 = vpop.f32.mrf.mxu0 }
 0x1b7   : > { %6578 = vst [vmem:[#allocation12_spill] sm:$0xff] %v6105_v52  ;;  %v6107_v14 = vpop.f32.mrf.mxu1 }
 0x1b8   : > { %6579 = vst [vmem:[#allocation13_spill] sm:$0xff] %v6107_v14  ;;  %v6109_v1 = vpop.f32.mrf.mxu0 }
 0x1b9   : > { %6580 = vst [vmem:[#allocation27_spill] sm:$0xff] %v6109_v1  ;;  %v6111_v40 = vpop.f32.mrf.mxu1 }
 0x1ba   : > { %6581 = vst [vmem:[#allocation28_spill] sm:$0xff] %v6111_v40  ;;  %v6113_v16 = vpop.f32.mrf.mxu0 }
 0x1bb   : > { %6582 = vst [vmem:[#allocation29_spill] sm:$0xff] %v6113_v16  ;;  %v6115_v58 = vpop.f32.mrf.mxu1 }
 0x1bc   : > { %6583 = vst [vmem:[#allocation30_spill] sm:$0xff] %v6115_v58  ;;  %v6117_v34 = vpop.f32.mrf.mxu0 }
 0x1bd   : > { %6584 = vst [vmem:[#allocation31_spill] sm:$0xff] %v6117_v34  ;;  %v6119_v0 = vpop.f32.mrf.mxu1 }
 0x1be   : > { %6585 = vst [vmem:[#allocation32_spill] sm:$0xff] %v6119_v0  ;;  %v6121_v24 = vpop.f32.mrf.mxu0 }
 0x1bf   : > { %6586 = vst [vmem:[#allocation33_spill] sm:$0xff] %v6121_v24  ;;  %v6123_v63 = vpop.f32.mrf.mxu1 }
 0x1c0   : > { %6587 = vst [vmem:[#allocation34_spill] sm:$0xff] %v6123_v63  ;;  %v6125_v52 = vpop.f32.mrf.mxu0 }
 0x1c1   : > { %6588 = vst [vmem:[#allocation35_spill] sm:$0xff] %v6125_v52  ;;  %v6127_v14 = vpop.f32.mrf.mxu1 }
 0x1c2   : > { %6589 = vst [vmem:[#allocation36_spill] sm:$0xff] %v6127_v14  ;;  %v6129_v1 = vpop.f32.mrf.mxu0 }
 0x1c3   : > { %6590 = vst [vmem:[#allocation37_spill] sm:$0xff] %v6129_v1  ;;  %v6131_v40 = vpop.f32.mrf.mxu1  ;;  %v2604_v1 = vadd.f32 %v4372_v33, %v5941_v11 }
 0x1c4   : > { %v6133_v16 = vpop.f32.mrf.mxu0 }
 0x1c5   : > { %6591 = vst [vmem:[#allocation38_spill] sm:$0xff] %v6133_v16  ;;  %v6135_v58 = vpop.f32.mrf.mxu1 }
 0x1c6   : > { %6592 = vst [vmem:[#allocation39_spill] sm:$0xff] %v6135_v58  ;;  %v6137_v34 = vpop.f32.mrf.mxu0 }
 0x1c7   : > { %6593 = vst [vmem:[#allocation40_spill] sm:$0xff] %v6137_v34  ;;  %v6139_v0 = vpop.f32.mrf.mxu1  ;;  %v2602_v34 = vadd.f32 %v2443_v31, %v5944_v17 }
 0x1c8   : > { %6594 = vst [vmem:[#allocation41_spill] sm:$0xff] %v6139_v0  ;;  %v6141_v24 = vpop.f32.mrf.mxu0 }
 0x1c9   : > { %6595 = vst [vmem:[#allocation42_spill] sm:$0xff] %v6141_v24  ;;  %v6143_v41 = vpop.f32.mrf.mxu1 }
 0x1ca   : > { %6596 = vst [vmem:[#allocation43_spill] sm:$0xff] %v6143_v41  ;;  %v6145_v63 = vpop.f32.mrf.mxu0 }
 0x1cb   : > { %6597 = vst [vmem:[#allocation44_spill] sm:$0xff] %v6145_v63  ;;  %v6147_v52 = vpop.f32.mrf.mxu1  ;;  %v2605_v63 = vadd.f32 %v6039_v7, %v5947_v6 }
 0x1cc   : > { %6598 = vst [vmem:[#allocation45_spill] sm:$0xff] %v6147_v52  ;;  %v6150_v14 = vpop.f32.mrf.mxu0  ;;  %v2874_v52 = vadd.f32 %v6035_v12, %v2604_v1  ;;  %v2606_v12 = vadd.f32 %v6051_v42, %v5956_v26 }
 0x1cd   : > { %6599 = vst [vmem:[#allocation46_spill] sm:$0xff] %v6150_v14  ;;  %v6155_v16 = vpop.f32.mrf.mxu1  ;;  %v2603_v14 = vadd.f32 %v6043_v25, %v5950_v4 }
 0x1ce   : > { %6600 = vst [vmem:[#allocation47_spill] sm:$0xff] %v6155_v16  ;;  %v6158_v0 = vpop.f32.mrf.mxu0  ;;  %v2872_v16 = vadd.f32 %v6037_v9, %v2602_v34 }
 0x1cf   : > { %6601 = vst [vmem:[#allocation48_spill] sm:$0xff] %v6158_v0  ;;  %v6160_v24 = vpop.f32.mrf.mxu1  ;;  %v2608_v0 = vadd.f32 %v6047_v3, %v5953_v22 }
 0x1d0   : > { %6602 = vst [vmem:[#allocation49_spill] sm:$0xff] %v6160_v24  ;;  %v6166_v11 = vpop.f32.mrf.mxu0  ;;  %v2875_v24 = vadd.f32 %v6041_v51, %v2605_v63  ;;  %v2876_v51 = vadd.f32 %v6053_v57, %v2606_v12  ;;  %v2610_v57 = vadd.f32 %v6067_v62, %v5968_v53 }
 0x1d1   : > { %6603 = vst [vmem:[#allocation50_spill] sm:$0xff] %v6166_v11  ;;  %v4440_v33 = vpop.f32.mrf.mxu1  ;;  %v2873_v11 = vadd.f32 %v6045_v5, %v2603_v14 }
 0x1d2   : > { %v3166_v41 = vadd.f32 %v4440_v33, %v2874_v52  ;;  %v4474_v17 = vpop.f32.mrf.mxu0 }
 0x1d3   : > { %v3005_v31 = vpop.f32.mrf.mxu1 }
 0x1d4   : > { %v3164_v58 = vadd.f32 %v3005_v31, %v2872_v16  ;;  %v3442_v6 = vadd.f32 %v4474_v17, %v3166_v41  ;;  %v3281_v7 = vpop.f32.mrf.mxu0  ;;  %v2609_v16 = vadd.f32 %v6055_v20, %v5959_v10  ;;  %v2878_v41 = vadd.f32 %v6049_v13, %v2608_v0 }
 0x1d5   : > { %v4441_v1 = vpop.f32.mrf.mxu1  ;;  %v2612_v10 = vadd.f32 %v6063_v2, %v5965_v50 }
 0x1d6   : > { %v3167_v4 = vadd.f32 %v4441_v1, %v2875_v24  ;;  %3474 = vst [vmem:[%s6177_s10 + $0x10] sm:$0xff] %v3442_v6  ;;  %v3440_v34 = vadd.f32 %v3281_v7, %v3164_v58  ;;  %v4475_v22 = vpop.f32.mrf.mxu0  ;;  %v2607_v24 = vadd.f32 %v6059_v30, %v5962_v39  ;;  %v2879_v0 = vadd.f32 %v6057_v60, %v2609_v16 }
 0x1d7   : > { %v3008_v52 = vpop.f32.mrf.mxu1  ;;  %v3576_v31 = vmul.f32 %v3442_v6, %v3442_v6  ;;  %v2613_v1 = vadd.f32 %v6071_v43, %v5971_v19  ;;  %v2882_v12 = vadd.f32 %v6065_v27, %v2612_v10 }
 0x1d8   : > { %v3165_v63 = vadd.f32 %v3008_v52, %v2873_v11  ;;  %3472 = vst [vmem:[%s6177_s10] sm:$0xff] %v3440_v34  ;;  %v3443_v26 = vadd.f32 %v4475_v22, %v3167_v4  ;;  %v3284_v14 = vpop.f32.mrf.mxu0  ;;  %v3574_v3 = vmul.f32 %v3440_v34, %v3440_v34  ;;  %v2877_v33 = vadd.f32 %v6061_v36, %v2607_v24 }
 0x1d9   : > { %v4444_v9 = vpop.f32.mrf.mxu1 }
 0x1da   : > { %v3170_v25 = vadd.f32 %v4444_v9, %v2878_v41  ;;  %3475 = vst [vmem:[%s6177_s10 + $0x18] sm:$0xff] %v3443_v26  ;;  %v3441_v58 = vadd.f32 %v3284_v14, %v3165_v63  ;;  %v4478_v5 = vpop.f32.mrf.mxu0  ;;  %v3577_v4 = vmul.f32 %v3443_v26, %v3443_v26  ;;  %v2880_v41 = vadd.f32 %v6069_v23, %v2610_v57 }
 0x1db   : > { %v3021_v13 = vpop.f32.mrf.mxu1  ;;  %v2883_v9 = vadd.f32 %v6073_v56, %v2613_v1 }
 0x1dc   : > { %v3168_v42 = vadd.f32 %v3021_v13, %v2876_v51  ;;  %3473 = vst [vmem:[%s6177_s10 + $0x8] sm:$0xff] %v3441_v58  ;;  %v3536_v20 = vadd.f32 %v3441_v58, %v3440_v34  ;;  %v3575_v11 = vmul.f32 %v3441_v58, %v3441_v58  ;;  %v3446_v39 = vadd.f32 %v4478_v5, %v3170_v25  ;;  %v3297_v30 = vpop.f32.mrf.mxu0 }
 0x1dd   : > { %v4445_v17 = vpop.f32.mrf.mxu1  ;;  %v2616_v25 = vadd.f32 %v6079_v38, %v5977_v46  ;;  %v2617_v46 = vadd.f32 %v6087_v47, %v5983_v45 }
 0x1de   : > { %v3537_v7 = vadd.f32 %v3536_v20, %v3442_v6  ;;  %v3606_v50 = vadd.f32 %v3575_v11, %v3574_v3  ;;  %v3171_v60 = vadd.f32 %v4445_v17, %v2879_v0  ;;  %3478 = vst [vmem:[%s6177_s10 + $0x30] sm:$0xff] %v3446_v39  ;;  %v4479_v2 = vpop.f32.mrf.mxu0  ;;  %v3444_v22 = vadd.f32 %v3297_v30, %v3168_v42 }
 0x1df   : > { %v3024_v34 = vpop.f32.mrf.mxu1  ;;  %v2611_v6 = vadd.f32 %v6075_v54, %v5974_v29  ;;  %v2614_v3 = vadd.f32 %v6083_v55, %v5980_v37  ;;  %v3580_v38 = vmul.f32 %v3446_v39, %v3446_v39 }
 0x1e0   : > { %v3607_v53 = vadd.f32 %v3606_v50, %v3576_v31  ;;  %v3169_v62 = vadd.f32 %v3024_v34, %v2877_v33  ;;  %v3538_v36 = vadd.f32 %v3537_v7, %v3443_v26  ;;  %v3447_v16 = vadd.f32 %v4479_v2, %v3171_v60  ;;  %v3300_v52 = vpop.f32.mrf.mxu0  ;;  %3476 = vst [vmem:[%s6177_s10 + $0x20] sm:$0xff] %v3444_v22 }
 0x1e1   : > { %v4448_v63 = vpop.f32.mrf.mxu1  ;;  %v3578_v43 = vmul.f32 %v3444_v22, %v3444_v22  ;;  %v2881_v13 = vadd.f32 %v6077_v49, %v2611_v6  ;;  %v2886_v33 = vadd.f32 %v6081_v61, %v2616_v25  ;;  %v2615_v60 = vadd.f32 %v6091_v18, %v5986_v44 }
 0x1e2   : > { %v3539_v19 = vadd.f32 %v3538_v36, %v3444_v22  ;;  %v3608_v27 = vadd.f32 %v3607_v53, %v3577_v4  ;;  %v3174_v14 = vadd.f32 %v4448_v63, %v2882_v12  ;;  %3479 = vst [vmem:[%s6177_s10 + $0x38] sm:$0xff] %v3447_v16  ;;  %v4482_v24 = vpop.f32.mrf.mxu0  ;;  %v3445_v51 = vadd.f32 %v3300_v52, %v3169_v62 }
 0x1e3   : > { %v3037_v26 = vpop.f32.mrf.mxu1  ;;  %v3581_v55 = vmul.f32 %v3447_v16, %v3447_v16  ;;  %v2884_v45 = vadd.f32 %v6085_v35, %v2614_v3  ;;  %v2887_v61 = vadd.f32 %v6089_v15, %v2617_v46  ;;  %v2620_v22 = vadd.f32 %v6095_v8, %v5989_v28  ;;  %v6604_v28 = vld [vmem:[#allocation10_spill] sm:$0xff] }
 0x1e4   : > { %v3609_v29 = vadd.f32 %v3608_v27, %v3578_v43  ;;  %v3172_v54 = vadd.f32 %v3037_v26, %v2880_v41  ;;  %v3450_v23 = vadd.f32 %v4482_v24, %v3174_v14  ;;  %v3313_v58 = vpop.f32.mrf.mxu0  ;;  %3477 = vst [vmem:[%s6177_s10 + $0x28] sm:$0xff] %v3445_v51  ;;  %v3540_v5 = vadd.f32 %v3539_v19, %v3445_v51  ;;  %v6605_v24 = vld [vmem:[#allocation25_spill] sm:$0xff] }
 0x1e5   : > { %v3579_v10 = vmul.f32 %v3445_v51, %v3445_v51  ;;  %v4449_v0 = vpop.f32.mrf.mxu1  ;;  %v2618_v15 = vadd.f32 %v6099_v59, %v5992_v48  ;;  %v2885_v52 = vadd.f32 %v6093_v32, %v2615_v60  ;;  %v2621_v8 = vadd.f32 %v6604_v28, %v5995_v21  ;;  %v6608_v21 = vld [vmem:[#allocation9_spill] sm:$0xff]  ;;  %v6613_v60 = vld [vmem:[#allocation30_spill] sm:$0xff] }
 0x1e6   : > { %v3175_v56 = vadd.f32 %v4449_v0, %v2883_v9  ;;  %3482 = vst [vmem:[%s6177_s10 + $0x50] sm:$0xff] %v3450_v23  ;;  %v3448_v42 = vadd.f32 %v3313_v58, %v3172_v54  ;;  %v4483_v20 = vpop.f32.mrf.mxu0  ;;  %v3541_v11 = vadd.f32 %v3540_v5, %v3446_v39  ;;  %v3584_v19 = vmul.f32 %v3450_v23, %v3450_v23  ;;  %v6606_v54 = vld [vmem:[#allocation16_spill] sm:$0xff]  ;;  %v6607_v58 = vld [vmem:[#allocation13_spill] sm:$0xff] }
 0x1e7   : > { %v3610_v30 = vadd.f32 %v3609_v29, %v3579_v10  ;;  %v3040_v57 = vpop.f32.mrf.mxu1  ;;  %v2890_v9 = vadd.f32 %v6605_v24, %v2620_v22  ;;  %v2619_v5 = vadd.f32 %v6607_v58, %v6606_v54  ;;  %v2888_v10 = vadd.f32 %v6608_v21, %v2618_v15  ;;  %v6622_v54 = vld [vmem:[#allocation24_spill] sm:$0xff] }
 0x1e8   : > { %v3173_v17 = vadd.f32 %v3040_v57, %v2881_v13  ;;  %3480 = vst [vmem:[%s6177_s10 + $0x40] sm:$0xff] %v3448_v42  ;;  %v3451_v31 = vadd.f32 %v4483_v20, %v3175_v56  ;;  %v3316_v37 = vpop.f32.mrf.mxu0  ;;  %v3542_v7 = vadd.f32 %v3541_v11, %v3447_v16  ;;  %v3582_v12 = vmul.f32 %v3448_v42, %v3448_v42  ;;  %v6609_v13 = vld [vmem:[#allocation12_spill] sm:$0xff]  ;;  %v6610_v11 = vld [vmem:[#allocation17_spill] sm:$0xff] }
 0x1e9   : > { %v3611_v49 = vadd.f32 %v3610_v30, %v3580_v38  ;;  %v4452_v50 = vpop.f32.mrf.mxu1  ;;  %v2891_v56 = vadd.f32 %v6609_v13, %v2621_v8  ;;  %v6611_v30 = vld [vmem:[#allocation28_spill] sm:$0xff]  ;;  %v6618_v8 = vld [vmem:[#allocation15_spill] sm:$0xff] }
 0x1ea   : > { %v3178_v47 = vadd.f32 %v4452_v50, %v2886_v33  ;;  %3483 = vst [vmem:[%s6177_s10 + $0x58] sm:$0xff] %v3451_v31  ;;  %v3449_v39 = vadd.f32 %v3316_v37, %v3173_v17  ;;  %v4486_v2 = vpop.f32.mrf.mxu0  ;;  %v3543_v1 = vadd.f32 %v3542_v7, %v3448_v42  ;;  %v3585_v59 = vmul.f32 %v3451_v31, %v3451_v31  ;;  %v6612_v50 = vld [vmem:[#allocation22_spill] sm:$0xff]  ;;  %v6623_v58 = vld [vmem:[#allocation36_spill] sm:$0xff] }
 0x1eb   : > { %v3612_v4 = vadd.f32 %v3611_v49, %v3581_v55  ;;  %v3053_v34 = vpop.f32.mrf.mxu1  ;;  %v2624_v57 = vadd.f32 %v6611_v30, %v6610_v11 }
 0x1ec   : > { %v3176_v53 = vadd.f32 %v3053_v34, %v2884_v45  ;;  %3481 = vst [vmem:[%s6177_s10 + $0x48] sm:$0xff] %v3449_v39  ;;  %v3583_v62 = vmul.f32 %v3449_v39, %v3449_v39  ;;  %v3454_v44 = vadd.f32 %v4486_v2, %v3178_v47  ;;  %v3329_v18 = vpop.f32.mrf.mxu0  ;;  %v3544_v36 = vadd.f32 %v3543_v1, %v3449_v39  ;;  %v6614_v47 = vld [vmem:[#allocation27_spill] sm:$0xff] }
 0x1ed   : > { %v3613_v35 = vadd.f32 %v3612_v4, %v3582_v12  ;;  %v4453_v16 = vpop.f32.mrf.mxu1  ;;  %v2622_v45 = vadd.f32 %v6613_v60, %v6612_v50  ;;  %v2889_v39 = vadd.f32 %v6614_v47, %v2619_v5  ;;  %v6615_v12 = vld [vmem:[#allocation23_spill] sm:$0xff]  ;;  %v6616_v4 = vld [vmem:[#allocation32_spill] sm:$0xff]  ;;  %v6628_v50 = vld [vmem:[#allocation37_spill] sm:$0xff] }
 0x1ee   : > { %v3179_v6 = vadd.f32 %v4453_v16, %v2887_v61  ;;  %3486 = vst [vmem:[%s6177_s10 + $0x70] sm:$0xff] %v3454_v44  ;;  %v3452_v41 = vadd.f32 %v3329_v18, %v3176_v53  ;;  %v4487_v63 = vpop.f32.mrf.mxu0  ;;  %v3545_v43 = vadd.f32 %v3544_v36, %v3450_v23  ;;  %v2625_v34 = vadd.f32 %v6616_v4, %v6615_v12  ;;  %v6629_v12 = vld [vmem:[#allocation14_spill] sm:$0xff]  ;;  %v6630_v4 = vld [vmem:[#allocation41_spill] sm:$0xff] }
 0x1ef   : > { %v3614_v27 = vadd.f32 %v3613_v35, %v3583_v62  ;;  %v3056_v14 = vpop.f32.mrf.mxu1  ;;  %v3588_v22 = vmul.f32 %v3454_v44, %v3454_v44  ;;  %v6617_v35 = vld [vmem:[#allocation29_spill] sm:$0xff] }
 0x1f0   : > { %v3177_v26 = vadd.f32 %v3056_v14, %v2885_v52  ;;  %3484 = vst [vmem:[%s6177_s10 + $0x60] sm:$0xff] %v3452_v41  ;;  %v3455_v51 = vadd.f32 %v4487_v63, %v3179_v6  ;;  %v3332_v48 = vpop.f32.mrf.mxu0  ;;  %v3546_v25 = vadd.f32 %v3545_v43, %v3451_v31  ;;  %v3586_v20 = vmul.f32 %v3452_v41, %v3452_v41 }
 0x1f1   : > { %v3615_v32 = vadd.f32 %v3614_v27, %v3584_v19  ;;  %v4456_v29 = vpop.f32.mrf.mxu1  ;;  %v2894_v36 = vadd.f32 %v6617_v35, %v2624_v57  ;;  %v6619_v19 = vld [vmem:[#allocation34_spill] sm:$0xff]  ;;  %v6620_v27 = vld [vmem:[#allocation31_spill] sm:$0xff]  ;;  %v6632_v35 = vld [vmem:[#allocation40_spill] sm:$0xff] }
 0x1f2   : > { %v3182_v0 = vadd.f32 %v4456_v29, %v2890_v9  ;;  %3487 = vst [vmem:[%s6177_s10 + $0x78] sm:$0xff] %v3455_v51  ;;  %v3453_v23 = vadd.f32 %v3332_v48, %v3177_v26  ;;  %v4490_v3 = vpop.f32.mrf.mxu0  ;;  %v3547_v42 = vadd.f32 %v3546_v25, %v3452_v41  ;;  %v3589_v6 = vmul.f32 %v3455_v51, %v3455_v51  ;;  %v6621_v26 = vld [vmem:[#allocation33_spill] sm:$0xff]  ;;  %v6626_v57 = vld [vmem:[#allocation26_spill] sm:$0xff] }
 0x1f3   : > { %v3616_v46 = vadd.f32 %v3615_v32, %v3585_v59  ;;  %v3069_v38 = vpop.f32.mrf.mxu1  ;;  %v2623_v43 = vadd.f32 %v6619_v19, %v6618_v8  ;;  %v2892_v14 = vadd.f32 %v6620_v27, %v2622_v45  ;;  %v2895_v48 = vadd.f32 %v6621_v26, %v2625_v34  ;;  %v6636_v26 = vld [vmem:[#allocation45_spill] sm:$0xff] }
 0x1f4   : > { %v3180_v33 = vadd.f32 %v3069_v38, %v2888_v10  ;;  %3485 = vst [vmem:[%s6177_s10 + $0x68] sm:$0xff] %v3453_v23  ;;  %v3587_v17 = vmul.f32 %v3453_v23, %v3453_v23  ;;  %v3458_v31 = vadd.f32 %v4490_v3, %v3182_v0  ;;  %v3345_v37 = vpop.f32.mrf.mxu0  ;;  %v3548_v49 = vadd.f32 %v3547_v42, %v3453_v23 }
 0x1f5   : > { %v3617_v55 = vadd.f32 %v3616_v46, %v3586_v20  ;;  %v4457_v7 = vpop.f32.mrf.mxu1  ;;  %v6625_v20 = vld [vmem:[#allocation35_spill] sm:$0xff]  ;;  %v2627_v34 = vadd.f32 %v6630_v4, %v6629_v12 }
 0x1f6   : > { %v3183_v2 = vadd.f32 %v4457_v7, %v2891_v56  ;;  %3490 = vst [vmem:[%s6177_s10 + $0x90] sm:$0xff] %v3458_v31  ;;  %v3456_v61 = vadd.f32 %v3345_v37, %v3180_v33  ;;  %v4491_v1 = vpop.f32.mrf.mxu0  ;;  %v3549_v53 = vadd.f32 %v3548_v49, %v3454_v44  ;;  %v6624_v56 = vld [vmem:[#allocation19_spill] sm:$0xff]  ;;  %v2893_v46 = vadd.f32 %v6625_v20, %v2623_v43 }
 0x1f7   : > { %v3618_v62 = vadd.f32 %v3617_v55, %v3587_v17  ;;  %v3072_v18 = vpop.f32.mrf.mxu1  ;;  %v2626_v42 = vadd.f32 %v6131_v40, %v6624_v56  ;;  %v6627_v33 = vld [vmem:[#allocation39_spill] sm:$0xff]  ;;  %v3592_v37 = vmul.f32 %v3458_v31, %v3458_v31 }
 0x1f8   : > { %v3181_v16 = vadd.f32 %v3072_v18, %v2889_v39  ;;  %3488 = vst [vmem:[%s6177_s10 + $0x80] sm:$0xff] %v3456_v61  ;;  %v3459_v15 = vadd.f32 %v4491_v1, %v3183_v2  ;;  %v3348_v52 = vpop.f32.mrf.mxu0  ;;  %v3550_v63 = vadd.f32 %v3549_v53, %v3455_v51  ;;  %v3590_v32 = vmul.f32 %v3456_v61, %v3456_v61 }
 0x1f9   : > { %v3619_v41 = vadd.f32 %v3618_v62, %v3588_v22  ;;  %v4460_v28 = vpop.f32.mrf.mxu1  ;;  %v2628_v51 = vadd.f32 %v6623_v58, %v6622_v54  ;;  %v2629_v17 = vadd.f32 %v6627_v33, %v6626_v57  ;;  %v6631_v22 = vld [vmem:[#allocation38_spill] sm:$0xff]  ;;  %v6641_v33 = vld [vmem:[#allocation20_spill] sm:$0xff] }
 0x1fa   : > { %v3186_v24 = vadd.f32 %v4460_v28, %v2894_v36  ;;  %3491 = vst [vmem:[%s6177_s10 + $0x98] sm:$0xff] %v3459_v15  ;;  %v3457_v44 = vadd.f32 %v3348_v52, %v3181_v16  ;;  %v4494_v9 = vpop.f32.mrf.mxu0  ;;  %v3551_v59 = vadd.f32 %v3550_v63, %v3456_v61  ;;  %v3593_v61 = vmul.f32 %v3459_v15, %v3459_v15  ;;  %v6633_v63 = vld [vmem:[#allocation18_spill] sm:$0xff]  ;;  %v6634_v28 = vld [vmem:[#allocation43_spill] sm:$0xff] }
 0x1fb   : > { %v3620_v25 = vadd.f32 %v3619_v41, %v3589_v6  ;;  %v3085_v29 = vpop.f32.mrf.mxu1  ;;  %v2898_v60 = vadd.f32 %v6628_v50, %v2628_v51  ;;  %v2896_v53 = vadd.f32 %v6631_v22, %v2626_v42  ;;  %v2899_v36 = vadd.f32 %v6632_v35, %v2629_v17  ;;  %v6642_v17 = vld [vmem:[#allocation49_spill] sm:$0xff] }
 0x1fc   : > { %v3184_v5 = vadd.f32 %v3085_v29, %v2892_v14  ;;  %3489 = vst [vmem:[%s6177_s10 + $0x88] sm:$0xff] %v3457_v44  ;;  %v3591_v21 = vmul.f32 %v3457_v44, %v3457_v44  ;;  %v3462_v10 = vadd.f32 %v4494_v9, %v3186_v24  ;;  %v3361_v0 = vpop.f32.mrf.mxu0  ;;  %v3552_v3 = vadd.f32 %v3551_v59, %v3457_v44  ;;  %v6635_v9 = vld [vmem:[#allocation21_spill] sm:$0xff]  ;;  %v6637_v59 = vld [vmem:[#allocation42_spill] sm:$0xff] }
 0x1fd   : > { %v3621_v23 = vadd.f32 %v3620_v25, %v3590_v32  ;;  %v4461_v13 = vpop.f32.mrf.mxu1  ;;  %v2897_v32 = vadd.f32 %v6637_v59, %v2627_v34 }
 0x1fe   : > { %v3187_v38 = vadd.f32 %v4461_v13, %v2895_v48  ;;  %3494 = vst [vmem:[%s6177_s10 + $0xb0] sm:$0xff] %v3462_v10  ;;  %v3460_v11 = vadd.f32 %v3361_v0, %v3184_v5  ;;  %v4495_v30 = vpop.f32.mrf.mxu0  ;;  %v3553_v7 = vadd.f32 %v3552_v3, %v3458_v31  ;;  %v2630_v48 = vadd.f32 %v6636_v26, %v6635_v9  ;;  %v6638_v0 = vld [vmem:[#allocation11_spill] sm:$0xff]  ;;  %v6640_v13 = vld [vmem:[#allocation44_spill] sm:$0xff] }
 0x1ff   : > { %v3622_v55 = vadd.f32 %v3621_v23, %v3591_v21  ;;  %v3088_v49 = vpop.f32.mrf.mxu1  ;;  %v3596_v5 = vmul.f32 %v3462_v10, %v3462_v10  ;;  %v6639_v23 = vld [vmem:[#allocation47_spill] sm:$0xff] }
 0x200   : > { %v3185_v45 = vadd.f32 %v3088_v49, %v2893_v46  ;;  %3492 = vst [vmem:[%s6177_s10 + $0xa0] sm:$0xff] %v3460_v11  ;;  %v3463_v47 = vadd.f32 %v4495_v30, %v3187_v38  ;;  %v3364_v40 = vpop.f32.mrf.mxu0  ;;  %v3554_v2 = vadd.f32 %v3553_v7, %v3459_v15  ;;  %v3594_v6 = vmul.f32 %v3460_v11, %v3460_v11 }
 0x201   : > { %v4464_v39 = vpop.f32.mrf.mxu1  ;;  %v3623_v1 = vadd.f32 %v3622_v55, %v3592_v37  ;;  %v2632_v15 = vadd.f32 %v6634_v28, %v6633_v63  ;;  %v2633_v3 = vadd.f32 %v6639_v23, %v6638_v0  ;;  %v2631_v37 = vadd.f32 %v6642_v17, %v6641_v33  ;;  %v6643_v55 = vld [vmem:[#allocation46_spill] sm:$0xff] }
 0x202   : > { %v3190_v62 = vadd.f32 %v4464_v39, %v2898_v60  ;;  %3495 = vst [vmem:[%s6177_s10 + $0xb8] sm:$0xff] %v3463_v47  ;;  %v3461_v18 = vadd.f32 %v3364_v40, %v3185_v45  ;;  %v4498_v31 = vpop.f32.mrf.mxu0  ;;  %v3555_v52 = vadd.f32 %v3554_v2, %v3460_v11  ;;  %v3597_v30 = vmul.f32 %v3463_v47, %v3463_v47  ;;  %v6644_v2 = vld [vmem:[#allocation48_spill] sm:$0xff] }
 0x203   : > { %v3101_v16 = vpop.f32.mrf.mxu1  ;;  %v3624_v41 = vadd.f32 %v3623_v1, %v3593_v61  ;;  %v2902_v56 = vadd.f32 %v6640_v13, %v2632_v15  ;;  %v2903_v61 = vadd.f32 %v6644_v2, %v2633_v3 }
 0x204   : > { %v3188_v8 = vadd.f32 %v3101_v16, %v2896_v53  ;;  %3493 = vst [vmem:[%s6177_s10 + $0xa8] sm:$0xff] %v3461_v18  ;;  %v3466_v19 = vadd.f32 %v4498_v31, %v3190_v62  ;;  %v3377_v43 = vpop.f32.mrf.mxu0  ;;  %v3595_v27 = vmul.f32 %v3461_v18, %v3461_v18  ;;  %v3556_v24 = vadd.f32 %v3555_v52, %v3461_v18  ;;  %v6645_v62 = vld [vmem:[#allocation50_spill] sm:$0xff] }
 0x205   : > { %v4465_v14 = vpop.f32.mrf.mxu1  ;;  %v3625_v44 = vadd.f32 %v3624_v41, %v3594_v6  ;;  %v2901_v18 = vadd.f32 %v6645_v62, %v2631_v37 }
 0x206   : > { %v3191_v25 = vadd.f32 %v4465_v14, %v2899_v36  ;;  %3498 = vst [vmem:[%s6177_s10 + $0xd0] sm:$0xff] %v3466_v19  ;;  %v3464_v29 = vadd.f32 %v3377_v43, %v3188_v8  ;;  %v4499_v54 = vpop.f32.mrf.mxu0  ;;  %v3557_v51 = vadd.f32 %v3556_v24, %v3462_v10  ;;  %v2900_v10 = vadd.f32 %v6643_v55, %v2630_v48 }
 0x207   : > { %v3104_v58 = vpop.f32.mrf.mxu1  ;;  %v3626_v21 = vadd.f32 %v3625_v44, %v3595_v27  ;;  %v3600_v6 = vmul.f32 %v3466_v19, %v3466_v19 }
 0x208   : > { %v3189_v42 = vadd.f32 %v3104_v58, %v2897_v32  ;;  %3496 = vst [vmem:[%s6177_s10 + $0xc0] sm:$0xff] %v3464_v29  ;;  %v3467_v20 = vadd.f32 %v4499_v54, %v3191_v25  ;;  %v3380_v46 = vpop.f32.mrf.mxu0  ;;  %v3558_v11 = vadd.f32 %v3557_v51, %v3463_v47  ;;  %v3598_v40 = vmul.f32 %v3464_v29, %v3464_v29 }
 0x209   : > { %v4468_v38 = vpop.f32.mrf.mxu1  ;;  %v3627_v57 = vadd.f32 %v3626_v21, %v3596_v5 }
 0x20a   : > { %v3194_v49 = vadd.f32 %v4468_v38, %v2902_v56  ;;  %3499 = vst [vmem:[%s6177_s10 + $0xd8] sm:$0xff] %v3467_v20  ;;  %v3465_v7 = vadd.f32 %v3380_v46, %v3189_v42  ;;  %v4502_v50 = vpop.f32.mrf.mxu0  ;;  %v3559_v45 = vadd.f32 %v3558_v11, %v3464_v29  ;;  %v3601_v43 = vmul.f32 %v3467_v20, %v3467_v20 }
 0x20b   : > { %v3117_v60 = vpop.f32.mrf.mxu1  ;;  %v3628_v39 = vadd.f32 %v3627_v57, %v3597_v30 }
 0x20c   : > { %v3192_v47 = vadd.f32 %v3117_v60, %v2900_v10  ;;  %3497 = vst [vmem:[%s6177_s10 + $0xc8] sm:$0xff] %v3465_v7  ;;  %v3470_v1 = vadd.f32 %v4502_v50, %v3194_v49  ;;  %v3393_v12 = vpop.f32.mrf.mxu0  ;;  %v3599_v4 = vmul.f32 %v3465_v7, %v3465_v7  ;;  %v3560_v22 = vadd.f32 %v3559_v45, %v3465_v7 }
 0x20d   : > { %v4469_v34 = vpop.f32.mrf.mxu1  ;;  %v3629_v53 = vadd.f32 %v3628_v39, %v3598_v40 }
 0x20e   : > { %v3195_v31 = vadd.f32 %v4469_v34, %v2903_v61  ;;  %3502 = vst [vmem:[%s6177_s10 + $0xf0] sm:$0xff] %v3470_v1  ;;  %v3468_v35 = vadd.f32 %v3393_v12, %v3192_v47  ;;  %v4503_v36 = vpop.f32.mrf.mxu0  ;;  %v3561_v52 = vadd.f32 %v3560_v22, %v3466_v19 }
 0x20f   : > { %v3120_v16 = vpop.f32.mrf.mxu1  ;;  %v3630_v41 = vadd.f32 %v3629_v53, %v3599_v4 }
 0x210   : > { %v3193_v63 = vadd.f32 %v3120_v16, %v2901_v18  ;;  %3500 = vst [vmem:[%s6177_s10 + $0xe0] sm:$0xff] %v3468_v35  ;;  %v3471_v28 = vadd.f32 %v4503_v36, %v3195_v31  ;;  %v3396_v15 = vpop.f32.mrf.mxu0  ;;  %v3562_v8 = vadd.f32 %v3561_v52, %v3467_v20  ;;  %v3602_v24 = vmul.f32 %v3468_v35, %v3468_v35 }
 0x211   : > { %v3631_v19 = vadd.f32 %v3630_v41, %v3600_v6 }
 0x212   : > { %3503 = vst [vmem:[%s6177_s10 + $0xf8] sm:$0xff] %v3471_v28  ;;  %v3469_v27 = vadd.f32 %v3396_v15, %v3193_v63  ;;  %v3563_v14 = vadd.f32 %v3562_v8, %v3468_v35 }
 0x213   : > { %v3632_v44 = vadd.f32 %v3631_v19, %v3601_v43 }
 0x214   : > { %3501 = vst [vmem:[%s6177_s10 + $0xe8] sm:$0xff] %v3469_v27  ;;  %v3603_v9 = vmul.f32 %v3469_v27, %v3469_v27  ;;  %v3564_v26 = vadd.f32 %v3563_v14, %v3469_v27 }
 0x215   : > { %4599 = shalt.err (!%p4596_p3)
}
 0x216   : > { %s4600_s5 = scalar_lea.hbm %s6294_s22, 4096  ;;  %s4604_s9 = scalar_lea.hbm %s6410_s2, 8192 }
 0x217   : > { %p4601_p4 = scmp.ne.s32.totalorder %s6294_s22, %s4600_s5  ;;  %p4605_p9 = scmp.lt.s32.totalorder %s6294_s22, %s6410_s2 }
 0x218   : > { %p4606_p10 = scmp.lt.s32.totalorder %s4604_s9, %s4600_s5 }
 0x219   : > { %p4602_p7 = pnand %p4601_p4, %p4774_p5 }
 0x21a   : > { %p4607_p11 = por %p4606_p10, %p4605_p9 }
 0x21b   : > { %p4603_p8 = pneg %p4602_p7 }
 0x21d   : > { %p4608_p12 = pnand %p4607_p11, %p4603_p8 }
 0x21f   : > { %4611 = shalt.err (!%p4608_p12)
}
 0x220   : > { %s4705_s13 = smov 128   ;;  %s4706_s14 = smov 8   ;;  %v3633_v48 = vadd.f32 %v3632_v44, %v3602_v24  ;;  %v3565_v59 = vadd.f32 %v3564_v26, %v3470_v1  ;;  %v3604_v32 = vmul.f32 %v3470_v1, %v3470_v1  ;;  %v3605_v54 = vmul.f32 %v3471_v28, %v3471_v28 }
 0x221   : > { %4517 = dma.vmem_to_hbm [thread:$0]  (%p4774_p5), %s6296_s12, 4096, %s6294_s22, %s3645_s23, %s4705_s13, %s4705_s13, %s4706_s14  }
 0x222   : > { %v3634_v25 = vadd.f32 %v3633_v48, %v3603_v9  ;;  %v3566_v29 = vadd.f32 %v3565_v59, %v3471_v28  ;;  %s3649_s27 = sand.u32 1, %s4755_s19   ;;  %s4040_s12 = sshll.u32 %s4755_s19, 4 }
 0x223   : > { %s200_s22 = scalar_lea.vmem [#allocation4], %s6153_s8  ;;  %s206_s28 = scalar_lea.vmem [#allocation6], %s6153_s8 }
 0x224   : > { %v3635_v58 = vadd.f32 %v3634_v25, %v3604_v32  ;;  %v3567_v51 = vrot.slane %v3566_v29, 4  ;;  %s3682_s23 = sshll.u32 %s200_s22, 4  ;;  %s3695_s29 = sshll.u32 %s206_s28, 4  ;;  %s6334_s23 = int_to_ptr.vmem [resolvable:$true] %s3682_s23  ;;  %s6341_s29 = int_to_ptr.vmem [resolvable:$true] %s3695_s29 }
 0x225   : > { %s6332_s6 = scalar_lea.hbm %s6411_s3, %s4040_s12  ;;  %s6339_s9 = scalar_lea.hbm %s6412_s4, %s4040_s12 }
 0x226   : > { %v3636_v5 = vadd.f32 %v3635_v58, %v3605_v54  ;;  %v3568_v21 = vadd.f32 %v3567_v51, %v3566_v29  ;;  %s6343_s10 = scalar_lea.sflag [#allocation5], %s3649_s27  ;;  %s4612_s11 = scalar_lea.vmem %s6334_s23, 16 }
 0x227   : > { %p4613_p13 = scmp.ne.s32.totalorder %s6334_s23, %s4612_s11  ;;  %s4707_s13 = smov [#allocation4]  }
 0x228   : > { %v3637_v0 = vrot.slane %v3636_v5, 4  ;;  %v3569_v23 = vrot.slane %v3568_v21, 2  ;;  %s4616_s14 = sshll.u32 %s4707_s13, 4  ;;  %s4617_s14 = int_to_ptr.vmem [resolvable:$false] %s4616_s14 }
 0x229   : > { %p4614_p0 = pnand %p4613_p13, %p4774_p5  ;;  %s4618_s30 = scalar_lea.vmem %s4617_s14, 32 }
 0x22a   : > { %v3638_v3 = vadd.f32 %v3637_v0, %v3636_v5  ;;  %v3570_v13 = vadd.f32 %v3569_v23, %v3568_v21  ;;  %p4619_p2 = scmp.lt.s32.totalorder %s6334_s23, %s4617_s14  ;;  %p4620_p3 = scmp.lt.s32.totalorder %s4618_s30, %s4612_s11 }
 0x22b   : > { %p4615_p1 = pneg %p4614_p0 }
 0x22c   : > { %v3639_v56 = vrot.slane %v3638_v3, 2  ;;  %v3571_v42 = vrot.slane %v3570_v13, 1  ;;  %p4621_p4 = por %p4620_p3, %p4619_p2 }
 0x22e   : > { %v3640_v20 = vadd.f32 %v3639_v56, %v3638_v3  ;;  %v3572_v46 = vadd.f32 %v3571_v42, %v3570_v13  ;;  %p4622_p7 = pnand %p4621_p4, %p4615_p1 }
 0x230   : > { %v3641_v38 = vrot.slane %v3640_v20, 1  ;;  %3573 = vst [vmem:[%s200_s22] sm:$0x1] %v3572_v46 }
 0x232   : > { %v3642_v11 = vadd.f32 %v3641_v38, %v3640_v20 }
 0x233   : > { %4625 = shalt.err (!%p4622_p7)
}
 0x234   : > { %s4626_s27 = scalar_lea.hbm %s6332_s6, 16  ;;  %s4630_s5 = scalar_lea.hbm %s6411_s3, 32 }
 0x235   : > { %p4627_p8 = scmp.ne.s32.totalorder %s6332_s6, %s4626_s27  ;;  %p4631_p11 = scmp.lt.s32.totalorder %s6332_s6, %s6411_s3 }
 0x236   : > { %p4632_p12 = scmp.lt.s32.totalorder %s4630_s5, %s4626_s27 }
 0x237   : > { %p4628_p9 = pnand %p4627_p8, %p4774_p5 }
 0x238   : > { %p4633_p13 = por %p4632_p12, %p4631_p11 }
 0x239   : > { %p4629_p10 = pneg %p4628_p9 }
 0x23b   : > { %p4634_p0 = pnand %p4633_p13, %p4629_p10 }
 0x23d   : > { %4637 = shalt.err (!%p4634_p0)
}
 0x23e   : > { %4518 = dma.vmem_to_hbm [thread:$0]  (%p4774_p5), %s6334_s23, 16, %s6332_s6, %s6343_s10   ;;  %3643 = vst [vmem:[%s206_s28] sm:$0x1] %v3642_v11 }
 0x23f   : > { %s4638_s11 = scalar_lea.vmem %s6341_s29, 16  ;;  %s4708_s13 = smov [#allocation6]  }
 0x240   : > { %p4639_p1 = scmp.ne.s32.totalorder %s6341_s29, %s4638_s11  ;;  %s4642_s14 = sshll.u32 %s4708_s13, 4  ;;  %s4643_s14 = int_to_ptr.vmem [resolvable:$false] %s4642_s14 }
 0x241   : > { %s4644_s30 = scalar_lea.vmem %s4643_s14, 32  ;;  %p4645_p4 = scmp.lt.s32.totalorder %s6341_s29, %s4643_s14 }
 0x242   : > { %p4640_p2 = pnand %p4639_p1, %p4774_p5  ;;  %p4646_p7 = scmp.lt.s32.totalorder %s4644_s30, %s4638_s11 }
 0x244   : > { %p4641_p3 = pneg %p4640_p2  ;;  %p4647_p8 = por %p4646_p7, %p4645_p4 }
 0x246   : > { %p4648_p9 = pnand %p4647_p8, %p4641_p3 }
 0x248   : > { %4651 = shalt.err (!%p4648_p9)
}
 0x249   : > { %s4652_s8 = scalar_lea.hbm %s6339_s9, 16  ;;  %s4656_s6 = scalar_lea.hbm %s6412_s4, 32 }
 0x24a   : > { %p4653_p10 = scmp.ne.s32.totalorder %s6339_s9, %s4652_s8  ;;  %p4657_p13 = scmp.lt.s32.totalorder %s6339_s9, %s6412_s4 }
 0x24b   : > { %p4658_p0 = scmp.lt.s32.totalorder %s4656_s6, %s4652_s8 }
 0x24c   : > { %p4654_p11 = pnand %p4653_p10, %p4774_p5 }
 0x24d   : > { %p4659_p1 = por %p4658_p0, %p4657_p13 }
 0x24e   : > { %p4655_p12 = pneg %p4654_p11 }
 0x250   : > { %p4660_p2 = pnand %p4659_p1, %p4655_p12 }
 0x252   : > { %4663 = shalt.err (!%p4660_p2)
}
 0x253   : > { %4519 = dma.vmem_to_hbm [thread:$0]  (%p4774_p5), %s6341_s29, 16, %s6339_s9, %s6343_s10  }
 0x254 PF: > { %p4533_p3 = scmp.ge.s32.totalorder %s4702_s18, 2  ;;  %s3707_s22 = sand.u32 1, %s4690_s15  }
 0x255   : > { %s3708_s5 = scalar_lea.sflag [#allocation3], %s3707_s22 }
 0x256   : > { %p4524_p4 = pnand %p4533_p3, %p4778_p6 }
 0x258   : > { %p4525_p7 = pneg %p4524_p4 }
 0x25a   : > { %4681 = dma.done.wait (%p4525_p7), %s3708_s5, 4096  }
 0x25b   : > { %4683 = vsyncadd (%p4525_p7), %s3708_s5, 4294963200  ;;  %s3716_s19 = sand.u32 1, %s3807_s20  }
 0x25c   : > { %s3717_s25 = scalar_lea.sflag [#allocation5], %s3716_s19 }
 0x25d   : > { %4685 = dma.done.wait (%p4525_p7), %s3717_s25, 32  }
 0x25e   : > { %4687 = vsyncadd (%p4525_p7), %s3717_s25, 4294967264  ;;  %p18_p5 = scmp.ge.s32.totalorder %s4759_s21, 4   ;;  %s6646_s15 = smov %s4694_s16 }
 0x25f   : > { %s6647_s16 = smov %s4698_s17  ;;  %s6648_s17 = smov %s4772_s24 }
 0x260   : > { %s6649_s18 = smov %s4759_s21  ;;  %20 = sbr.rel (!%p18_p5) target bundleno = 5 (0x5), region = 103 }
 0x265   :  { %3729 = vsyncpa [#allocation3], 1 }
 0x266   :  { %3731 = vsyncpa [#allocation3 + $0x1], 1 }
 0x267   :  { %3732 = vsyncpa [#allocation5], 1 }
 0x268   :  { %3734 = vsyncpa [#allocation5 + $0x1], 1 }

</bundles_post_ra>
